<compile_context>
chip_gen: v7x
topology: tpu7x:2x2x1
jax: 0.10.0
libtpu: 0.0.40
codegen_flags: <defaults>
</compile_context>

<pallas_src>
import functools

import jax
import jax.numpy as jnp
from jax import lax
from jax.experimental import pallas as pl
from jax.experimental.pallas import tpu as pltpu

_LANE = 128
_SUBLANE = 8


def _round_up(x, m):
    return (x + m - 1) // m * m


def _device_kind():
    try:
        return jax.devices()[0].device_kind.lower()
    except Exception:
        return ""


def _soft_target_kernel(s_ref, t_ref, o_ref, acc_ref, *,
                        n_rows, n_cols, block_n, blocks_per_split, has_tail):
    i = pl.program_id(0)   # TensorCore split (parallel; size 1 on v5e/v6e)
    j = pl.program_id(1)   # row-block within the split (reduction axis)

    @pl.when(j == 0)
    def _():
        acc_ref[...] = jnp.zeros_like(acc_ref)

    s = s_ref[...].astype(jnp.float32)
    t = t_ref[...].astype(jnp.float32)

    # student: only the log-sum-exp pieces are needed (log_p_s folded below)
    s_shift = s - jnp.max(s, axis=-1, keepdims=True)
    sum_s = jnp.sum(jnp.exp(s_shift), axis=-1, keepdims=True)

    # teacher softmax with a single full-width exp
    t_shift = t - jnp.max(t, axis=-1, keepdims=True)
    e_t = jnp.exp(t_shift)
    sum_t = jnp.sum(e_t, axis=-1, keepdims=True)
    p_t = e_t * pl.reciprocal(sum_t, approx=False)

    # log p_t - log p_s = (t_shift - s_shift) - (log sum_t - log sum_s);
    # the logs act only on (block_n, 1) columns.
    term = p_t * ((t_shift - s_shift) - (jnp.log(sum_t) - jnp.log(sum_s)))

    def fold_add(x):
        # fold the (block_n, C) tile onto the (8, C) accumulator with pure
        # VPU adds (groups of 8 rows align with the (8,128) sublane tiling)
        acc_ref[...] += jnp.sum(
            x.reshape(block_n // _SUBLANE, _SUBLANE, n_cols), axis=0)

    if has_tail:
        row_base = (i * blocks_per_split + j) * block_n
        needs_mask = row_base + block_n > n_rows

        @pl.when(jnp.logical_not(needs_mask))
        def _():
            fold_add(term)

        @pl.when(needs_mask)
        def _():
            # rows past N hold garbage from the edge DMA (possibly NaN/Inf);
            # a select keeps them inert. (block_n, 1) iota -> cheap.
            row_ids = row_base + lax.broadcasted_iota(
                jnp.int32, (block_n, 1), 0)
            fold_add(jnp.where(row_ids < n_rows, term, 0.0))
    else:
        fold_add(term)

    @pl.when(j == pl.num_programs(1) - 1)
    def _():
        # one cross-lane reduce per split (XLU, once per call -> negligible)
        o_ref[...] = jnp.sum(acc_ref[...], axis=-1, keepdims=True)


def _pick_block_n(n, c, in_itemsize, budget):
    # VMEM model: 2 inputs x 2 pipeline buffers in the input dtype plus ~7
    # live full-width f32 temporaries (s, t, shifts, e_t, p_t, term, ...).
    per_row = c * (2 * 2 * in_itemsize + 7 * 4)
    bn = max(_SUBLANE, min(budget // per_row, 1024))
    bn = (bn // _SUBLANE) * _SUBLANE
    if bn >= n:
        # largest sublane-aligned tile that still starts inside the array so
        # the trailing block is a standard partial block (n < 8 over-covers).
        bn = n if n % _SUBLANE == 0 else max(_SUBLANE, (n // _SUBLANE) * _SUBLANE)
    return bn


def soft_target_loss(out_s, out_t):
    """KL(softmax(out_t) || softmax(out_s)) with 'batchmean' reduction."""
    assert out_s.shape == out_t.shape and out_s.ndim == 2
    n, c = out_s.shape
    kind = _device_kind()

    if "v7" in kind:
        # v7x: 64 MiB physical / 32 MiB default-scoped VMEM, 2 TCs per chip
        budget, vmem_limit, num_splits = 20 * 1024 * 1024, 32 * 1024 * 1024, 2
    else:
        # v5e / v6e: single TensorCore, 128 MiB physical VMEM
        budget, vmem_limit, num_splits = 64 * 1024 * 1024, 100 * 1024 * 1024, 1

    block_n = _pick_block_n(n, c, out_s.dtype.itemsize, budget)
    total_blocks = pl.cdiv(n, block_n)
    if num_splits > total_blocks:
        num_splits = 1
    if num_splits > 1 and total_blocks % num_splits != 0:
        # prefer an even split so no split reads a duplicated, masked-to-zero
        # block; fall back to the in_map clamp if the resize fails.
        bn2 = _round_up(pl.cdiv(n, _round_up(total_blocks, num_splits)),
                        _SUBLANE)
        if bn2 >= _SUBLANE and pl.cdiv(n, bn2) % num_splits == 0:
            block_n = bn2
            total_blocks = pl.cdiv(n, block_n)
    blocks_per_split = pl.cdiv(total_blocks, num_splits)
    last_block = total_blocks - 1
    # a tail exists if the last real block is partial, or if a split is
    # over-allocated (clamped duplicate blocks, masked to zero in-kernel)
    has_tail = (n % block_n != 0) or (num_splits * blocks_per_split != total_blocks)

    def in_map(i, j):
        # clamp so over-allocated trailing blocks re-read the last real block;
        # their rows are masked to zero inside the kernel.
        return (jnp.minimum(i * blocks_per_split + j, last_block), 0)

    kernel = functools.partial(
        _soft_target_kernel,
        n_rows=n, n_cols=c, block_n=block_n,
        blocks_per_split=blocks_per_split, has_tail=has_tail)

    partials = pl.pallas_call(
        kernel,
        out_shape=jax.ShapeDtypeStruct((num_splits * _SUBLANE, 1), jnp.float32),
        grid_spec=pltpu.PrefetchScalarGridSpec(
            num_scalar_prefetch=0,
            grid=(num_splits, blocks_per_split),
            in_specs=[
                pl.BlockSpec((block_n, c), in_map),
                pl.BlockSpec((block_n, c), in_map),
            ],
            out_specs=pl.BlockSpec((_SUBLANE, 1), lambda i, j: (i, 0)),
            scratch_shapes=[pltpu.VMEM((_SUBLANE, c), jnp.float32)],
        ),
        compiler_params=pltpu.CompilerParams(
            dimension_semantics=("parallel", "arbitrary"),
            vmem_limit_bytes=vmem_limit,
        ),
        cost_estimate=pl.CostEstimate(
            flops=9 * n * c,
            transcendentals=2 * n * c,
            bytes_accessed=2 * n * c * out_s.dtype.itemsize
                           + num_splits * _SUBLANE * 4),
    )(out_s, out_t)

    # final tiny reduce + 'batchmean' normalization (glue ops)
    return jnp.sum(partials) / jnp.float32(n)


if __name__ == "__main__":
    key = jax.random.PRNGKey(0)
    k1, k2 = jax.random.split(key)
    # batch not a multiple of the row tile and classes not lane-aligned, so
    # the unpadded full-extent class block + tail-row masking are exercised.
    N, C = 100, 200
    out_s = jax.random.normal(k1, (N, C), dtype=jnp.float32)  # student logits
    out_t = jax.random.normal(k2, (N, C), dtype=jnp.float32)  # teacher logits

    loss = soft_target_loss(out_s, out_t)
    loss = jax.block_until_ready(loss)

    # pure-JAX reference
    log_p_s = jax.nn.log_softmax(out_s, axis=1)
    log_p_t = jax.nn.log_softmax(out_t, axis=1)
    p_t = jnp.exp(log_p_t)
    ref = jnp.sum(p_t * (log_p_t - log_p_s)) / N
    assert jnp.allclose(loss, ref, atol=1e-4, rtol=1e-4), (loss, ref)

    print("KERNEL_OK")
</pallas_src>

<mosaic_0001>
module attributes {stable_mosaic.version = 11 : i64} {
  func.func @_soft_target_kernel(%arg0: i32, %arg1: i32, %arg2: memref<96x200xf32, #tpu.memory_space<vmem>>, %arg3: memref<96x200xf32, #tpu.memory_space<vmem>>, %arg4: memref<8x1xf32, #tpu.memory_space<vmem>>, %arg5: memref<8x200xf32, #tpu.memory_space<vmem>>) attributes {dimension_semantics = [#tpu.dimension_semantics<parallel>, #tpu.dimension_semantics<arbitrary>], iteration_bounds = array<i64: 1, 2>, scalar_prefetch = 0 : i64, scratch_operands = 1 : i64, tpu.core_type = #tpu.core_type<tc>, window_params = [{transform_indices = @transform_0, window_bounds = array<i64: 96, 200>}, {transform_indices = @transform_1, window_bounds = array<i64: 96, 200>}, {transform_indices = @transform_2, window_bounds = array<i64: 8, 1>}]} {
    %c0_i32 = arith.constant 0 : i32
    %0 = arith.cmpi eq, %arg1, %c0_i32 : i32
    %1 = arith.extui %0 : i1 to i32
    %c0_i32_0 = arith.constant 0 : i32
    %2 = arith.cmpi ne, %1, %c0_i32_0 : i32
    scf.if %2 {
      %cst_11 = arith.constant 0.000000e+00 : f32
      %42 = vector.broadcast %cst_11 : f32 to vector<8x200xf32>
      %c0_12 = arith.constant 0 : index
      %c0_13 = arith.constant 0 : index
      %43 = vector.load %arg5[%c0_12, %c0_13] : memref<8x200xf32, #tpu.memory_space<vmem>>, vector<8x200xf32>
      tpu.vector_store %arg5[%c0_12, %c0_13], %42 {strides = array<i32>} : memref<8x200xf32, #tpu.memory_space<vmem>>, vector<8x200xf32>,
    } else {
    }
    %c0 = arith.constant 0 : index
    %c0_1 = arith.constant 0 : index
    %3 = vector.load %arg2[%c0, %c0_1] : memref<96x200xf32, #tpu.memory_space<vmem>>, vector<96x200xf32>
    %c0_2 = arith.constant 0 : index
    %c0_3 = arith.constant 0 : index
    %4 = vector.load %arg3[%c0_2, %c0_3] : memref<96x200xf32, #tpu.memory_space<vmem>>, vector<96x200xf32>
    %cst = arith.constant dense<0xFF800000> : vector<96xf32>
    %5 = vector.multi_reduction <maximumf>, %3, %cst [1] : vector<96x200xf32> to vector<96xf32>
    %6 = vector.shape_cast %5 : vector<96xf32> to vector<96x1xf32>
    %7 = vector.broadcast %6 : vector<96x1xf32> to vector<96x200xf32>
    %8 = arith.subf %3, %7 : vector<96x200xf32>
    %9 = math.exp %8 : vector<96x200xf32>
    %cst_4 = arith.constant dense<0.000000e+00> : vector<96xf32>
    %10 = vector.multi_reduction <add>, %9, %cst_4 [1] : vector<96x200xf32> to vector<96xf32>
    %11 = vector.shape_cast %10 : vector<96xf32> to vector<96x1xf32>
    %cst_5 = arith.constant dense<0xFF800000> : vector<96xf32>
    %12 = vector.multi_reduction <maximumf>, %4, %cst_5 [1] : vector<96x200xf32> to vector<96xf32>
    %13 = vector.shape_cast %12 : vector<96xf32> to vector<96x1xf32>
    %14 = vector.broadcast %13 : vector<96x1xf32> to vector<96x200xf32>
    %15 = arith.subf %4, %14 : vector<96x200xf32>
    %16 = math.exp %15 : vector<96x200xf32>
    %cst_6 = arith.constant dense<0.000000e+00> : vector<96xf32>
    %17 = vector.multi_reduction <add>, %16, %cst_6 [1] : vector<96x200xf32> to vector<96xf32>
    %18 = vector.shape_cast %17 : vector<96xf32> to vector<96x1xf32>
    %19 = tpu.reciprocal %18 : vector<96x1xf32> -> vector<96x1xf32>
    %20 = vector.broadcast %19 : vector<96x1xf32> to vector<96x200xf32>
    %21 = arith.mulf %16, %20 : vector<96x200xf32>
    %22 = arith.subf %15, %8 : vector<96x200xf32>
    %23 = math.log %18 : vector<96x1xf32>
    %24 = math.log %11 : vector<96x1xf32>
    %25 = arith.subf %23, %24 : vector<96x1xf32>
    %26 = vector.broadcast %25 : vector<96x1xf32> to vector<96x200xf32>
    %27 = arith.subf %22, %26 : vector<96x200xf32>
    %28 = arith.mulf %21, %27 : vector<96x200xf32>
    %c2_i32 = arith.constant 2 : i32
    %29 = arith.muli %arg0, %c2_i32 : i32
    %30 = arith.addi %29, %arg1 : i32
    %c96_i32 = arith.constant 96 : i32
    %31 = arith.muli %30, %c96_i32 : i32
    %c96_i32_7 = arith.constant 96 : i32
    %32 = arith.addi %31, %c96_i32_7 : i32
    %c100_i32 = arith.constant 100 : i32
    %33 = arith.cmpi sgt, %32, %c100_i32 : i32
    %true = arith.constant true
    %34 = arith.xori %33, %true : i1
    %35 = arith.extui %34 : i1 to i32
    %c0_i32_8 = arith.constant 0 : i32
    %36 = arith.cmpi ne, %35, %c0_i32_8 : i32
    scf.if %36 {
      %c0_11 = arith.constant 0 : index
      %c0_12 = arith.constant 0 : index
      %42 = vector.load %arg5[%c0_11, %c0_12] : memref<8x200xf32, #tpu.memory_space<vmem>>, vector<8x200xf32>
      %43 = vector.shape_cast %28 : vector<96x200xf32> to vector<12x8x200xf32>
      %cst_13 = arith.constant dense<0.000000e+00> : vector<8x200xf32>
      %44 = vector.multi_reduction <add>, %43, %cst_13 [0] : vector<12x8x200xf32> to vector<8x200xf32>
      %45 = arith.addf %42, %44 : vector<8x200xf32>
      %c0_14 = arith.constant 0 : index
      %c0_15 = arith.constant 0 : index
      %46 = vector.load %arg5[%c0_14, %c0_15] : memref<8x200xf32, #tpu.memory_space<vmem>>, vector<8x200xf32>
      tpu.vector_store %arg5[%c0_14, %c0_15], %45 {strides = array<i32>} : memref<8x200xf32, #tpu.memory_space<vmem>>, vector<8x200xf32>,
    } else {
    }
    %37 = arith.extui %33 : i1 to i32
    %c0_i32_9 = arith.constant 0 : i32
    %38 = arith.cmpi ne, %37, %c0_i32_9 : i32
    scf.if %38 {
      %42 = tpu.iota {dimensions = array<i32: 0>} : vector<96x1xi32>
      %43 = vector.broadcast %31 : i32 to vector<96x1xi32>
      %44 = arith.addi %43, %42 : vector<96x1xi32>
      %c100_i32_11 = arith.constant 100 : i32
      %45 = vector.broadcast %c100_i32_11 : i32 to vector<96x1xi32>
      %46 = arith.cmpi slt, %44, %45 : vector<96x1xi32>
      %cst_12 = arith.constant 0.000000e+00 : f32
      %47 = vector.shape_cast %46 : vector<96x1xi1> to vector<96x1xi1>
      %48 = vector.broadcast %47 : vector<96x1xi1> to vector<96x200xi1>
      %49 = vector.broadcast %cst_12 : f32 to vector<96x200xf32>
      %50 = arith.select %48, %28, %49 : vector<96x200xi1>, vector<96x200xf32>
      %c0_13 = arith.constant 0 : index
      %c0_14 = arith.constant 0 : index
      %51 = vector.load %arg5[%c0_13, %c0_14] : memref<8x200xf32, #tpu.memory_space<vmem>>, vector<8x200xf32>
      %52 = vector.shape_cast %50 : vector<96x200xf32> to vector<12x8x200xf32>
      %cst_15 = arith.constant dense<0.000000e+00> : vector<8x200xf32>
      %53 = vector.multi_reduction <add>, %52, %cst_15 [0] : vector<12x8x200xf32> to vector<8x200xf32>
      %54 = arith.addf %51, %53 : vector<8x200xf32>
      %c0_16 = arith.constant 0 : index
      %c0_17 = arith.constant 0 : index
      %55 = vector.load %arg5[%c0_16, %c0_17] : memref<8x200xf32, #tpu.memory_space<vmem>>, vector<8x200xf32>
      tpu.vector_store %arg5[%c0_16, %c0_17], %54 {strides = array<i32>} : memref<8x200xf32, #tpu.memory_space<vmem>>, vector<8x200xf32>,
    } else {
    }
    %c1_i32 = arith.constant 1 : i32
    %39 = arith.cmpi eq, %arg1, %c1_i32 : i32
    %40 = arith.extui %39 : i1 to i32
    %c0_i32_10 = arith.constant 0 : i32
    %41 = arith.cmpi ne, %40, %c0_i32_10 : i32
    scf.if %41 {
      %c0_11 = arith.constant 0 : index
      %c0_12 = arith.constant 0 : index
      %42 = vector.load %arg5[%c0_11, %c0_12] : memref<8x200xf32, #tpu.memory_space<vmem>>, vector<8x200xf32>
      %cst_13 = arith.constant dense<0.000000e+00> : vector<8xf32>
      %43 = vector.multi_reduction <add>, %42, %cst_13 [1] : vector<8x200xf32> to vector<8xf32>
      %44 = vector.shape_cast %43 : vector<8xf32> to vector<8x1xf32>
      %c0_14 = arith.constant 0 : index
      %c0_15 = arith.constant 0 : index
      %45 = vector.load %arg4[%c0_14, %c0_15] : memref<8x1xf32, #tpu.memory_space<vmem>>, vector<8x1xf32>
      tpu.vector_store %arg4[%c0_14, %c0_15], %44 {strides = array<i32>} : memref<8x1xf32, #tpu.memory_space<vmem>>, vector<8x1xf32>,
    } else {
    }
    return
  }
  func.func @transform_0(%arg0: i32, %arg1: i32) -> (i32, i32) {
    %c2_i32 = arith.constant 2 : i32
    %0 = arith.muli %arg0, %c2_i32 : i32
    %1 = arith.addi %0, %arg1 : i32
    %c1_i32 = arith.constant 1 : i32
    %2 = arith.minsi %1, %c1_i32 : i32
    %c0_i32 = arith.constant 0 : i32
    %c0_i32_0 = arith.constant 0 : i32
    return %2, %c0_i32 : i32, i32
  }
  func.func @transform_1(%arg0: i32, %arg1: i32) -> (i32, i32) {
    %c2_i32 = arith.constant 2 : i32
    %0 = arith.muli %arg0, %c2_i32 : i32
    %1 = arith.addi %0, %arg1 : i32
    %c1_i32 = arith.constant 1 : i32
    %2 = arith.minsi %1, %c1_i32 : i32
    %c0_i32 = arith.constant 0 : i32
    %c0_i32_0 = arith.constant 0 : i32
    return %2, %c0_i32 : i32, i32
  }
  func.func @transform_2(%arg0: i32, %arg1: i32) -> (i32, i32) {
    %c0_i32 = arith.constant 0 : i32
    %c0_i32_0 = arith.constant 0 : i32
    return %arg0, %c0_i32 : i32, i32
  }
}

</mosaic_0001>

<bundles_post_ra>
// kernel: tpu_custom_call.1
= control target key start
LH: loop header
LB: loop body
LE: loop exit
PB: predicated region body
PF: predicated region fallthrough
CT: control target
= control target key end

     0   :  { %7 = vsyncpa [#allocation4], 0  ;;  %s2581_s0 = inlined_call_operand.hbm [shape: f32[100,200], index: 0, kind: input, shape index: {}]   ;;  %s2582_s1 = inlined_call_operand.hbm [shape: f32[100,200], index: 1, kind: input, shape index: {}]   ;;  %s2583_s2 = inlined_call_operand.hbm [shape: f32[8,1], index: 2, kind: output, shape index: {}]  }
   0x1   :  { %9 = vsyncpa [#allocation4 + $0x1], 0 }
   0x2   :  { %10 = vsyncpa [#allocation7], 0 }
   0x3   :  { %12 = vsyncpa [#allocation7 + $0x1], 0 }
   0x4   :  { %13 = vsyncpa [#allocation5], 0  ;;  %s1542_s9 = smov 0   ;;  %s1544_s10 = smov 0  }
   0x5   :  { %s1546_s11 = smov 0   ;;  %s1548_s12 = smov 0  }
   0x6   :  { %s1550_s13 = smov 0   ;;  %s1552_s14 = smov 0  }
   0x7 LB: > { %s28_s15 = sadd.s32 1, %s1513_s13  ;;  %p37_p1 = scmp.lt.s32.totalorder %s1513_s13, 1  ;;  %s1517_s14 = sphi %s1552_s14, %s19_s14   ;;  %s1513_s13 = sphi %s1550_s13, %s2736_s13   ;;  %s1509_s12 = sphi %s1548_s12, %s2735_s12   ;;  %s1505_s11 = sphi %s1546_s11, %s2734_s11   ;;  %s1501_s10 = sphi %s1544_s10, %s2733_s10   ;;  %s1497_s9 = sphi %s1542_s9, %s2732_s9  }
   0x8   : > { %p29_p0 = scmp.ge.s32.totalorder %s28_s15, 2  ;;  %s1110_s16 = sadd.s32 4294967295, %s1517_s14  }
   0x9   : > { %p53_p2 = scmp.ne.s32.totalorder %s1505_s11, %s1501_s10  ;;  %p54_p4 = scmp.eq.s32.totalorder %s1517_s14, 0 }
   0xa   : > { %s2738_s15 = smov (%p29_p0, %s28_s15), 0  ;;  %p59_p5 = scmp.ne.s32.totalorder %s1501_s10, %s1497_s9 }
   0xb   : > { %s1578_s17 = scalar_select %p37_p1, %s1513_s13, 1 }
   0xc   : > { %p41_p3 = scmp.lt.s32.totalorder %s2738_s15, 1  ;;  %p60_p6 = scmp.eq.s32.totalorder %s1110_s16, 0 }
   0xd   : > { %p1586_p7 = por %p54_p4, %p53_p2  ;;  %s46_s22 = sadd.s32 1, %s1505_s11 }
   0xe   : > { %s42_s18 = scalar_select %p41_p3, %s2738_s15, 1 }
   0xf   : > { %p1590_p8 = por %p60_p6, %p59_p5  ;;  %p1112_p10 = scmp.ge.s32.totalorder %s1517_s14, 2 }
  0x10   : > { %s43_s21 = ssub.s32 %s1578_s17, %s42_s18 }
  0x11   : > { %p44_p9 = scmp.eq.s32.totalorder %s43_s21, 0  ;;  %139 = sbr.rel (%p1112_p10) target bundleno = 94 (0x5e), region = 16 }
  0x13   : > { %s1597_s23 = scalar_select %p44_p9, %s1505_s11, %s46_s22  }
  0x18   : > { %142 = sbr.rel (!%p1586_p7) target bundleno = 59 (0x3b), region = 20  ;;  %s143_s24 = sand.u32 (%p1586_p7), 1, %s1505_s11  }
  0x19   : > { %s152_s25 = smul.u32 (%p1586_p7), 12, %s1578_s17  ;;  %s1607_s30 = scalar_lea.sflag (%p1586_p7), [#allocation4], %s143_s24 }
  0x1a   : > { %s1144_s26 = smul.u32 (%p1586_p7), 192, %s143_s24 }
  0x1b   : > { %s153_s27 = ssub.s32 (%p1586_p7), 13, %s152_s25 }
  0x1c   : > { %p154_p11 = scmp.lt.s32.totalorder (%p1586_p7), %s153_s27, 12  ;;  %s147_s3 = scalar_lea.vmem (%p1586_p7), [#allocation3], %s1144_s26 }
  0x1f   : > { %s2740_s27 = smov (!%p154_p11, %s153_s27), 12 }
  0x20   : > { %s1604_s28 = sshll.u32 %s2740_s27, 8 }
  0x21   : > { %s159_s29 = ssub.s32 3072, %s1604_s28 }
  0x22   : > { %160 = vsyncadd %s1607_s30, %s159_s29  ;;  %p1115_p12 = scmp.ne.s32.totalorder %s1604_s28, 0  ;;  %s1142_s4 = smul.u32 3072, %s1578_s17 }
  0x23   : > { %s166_s5 = sshll.u32 %s147_s3, 4  ;;  %s1381_s22 = scalar_lea.hbm %s2581_s0, 3328  ;;  %s1617_s5 = int_to_ptr.vmem [resolvable:$true] %s166_s5 }
  0x24   : > { %s1615_s8 = scalar_lea.hbm %s2581_s0, %s1142_s4 }
  0x25   : > { %s1377_s9 = scalar_lea.hbm %s1615_s8, %s1604_s28  ;;  %p1382_p2 = scmp.lt.u32.totalorder %s1615_s8, %s2581_s0 }
  0x26   : > { %p1378_p13 = scmp.ne.s32.totalorder %s1615_s8, %s1377_s9  ;;  %p1383_p3 = scmp.lt.u32.totalorder %s1381_s22, %s1377_s9 }
  0x27   : > { %p1385_p5 = scmp.lt.u32.totalorder %s1377_s9, %s1615_s8 }
  0x28   : > { %p1379_p0 = pnand %p1378_p13, %p1115_p12  ;;  %p1384_p4 = por %p1383_p3, %p1382_p2 }
  0x2a   : > { %p1380_p1 = pneg %p1379_p0  ;;  %p1386_p6 = por %p1385_p5, %p1384_p4 }
  0x2c   : > { %p1387_p9 = pnand %p1386_p6, %p1380_p1 }
  0x2e   : > { %1390 = shalt.err (!%p1387_p9)
}
  0x2f   : > { %s1391_s26 = scalar_lea.vmem %s1617_s5, %s1604_s28  ;;  %s1519_s27 = smov [#allocation3]  }
  0x30   : > { %p1392_p10 = scmp.ne.s32.totalorder %s1617_s5, %s1391_s26  ;;  %s1395_s29 = sshll.u32 %s1519_s27, 4  ;;  %s1396_s29 = int_to_ptr.vmem [resolvable:$false] %s1395_s29 }
  0x31   : > { %s1397_s3 = scalar_lea.vmem %s1396_s29, 6144  ;;  %p1398_p0 = scmp.lt.s32.totalorder %s1617_s5, %s1396_s29 }
  0x32   : > { %p1393_p11 = pnand %p1392_p10, %p1115_p12  ;;  %p1399_p2 = scmp.lt.s32.totalorder %s1397_s3, %s1391_s26 }
  0x34   : > { %p1394_p13 = pneg %p1393_p11  ;;  %p1400_p3 = por %p1399_p2, %p1398_p0 }
  0x36   : > { %p1401_p4 = pnand %p1400_p3, %p1394_p13 }
  0x38   : > { %1404 = shalt.err (!%p1401_p4)
}
  0x39   : > { %s1520_s4 = smov 256   ;;  %s1521_s6 = smov 16  }
  0x3a   : > { %172 = dma.hbm_to_vmem [thread:$0]  (%p1115_p12), %s1615_s8, %s1604_s28, %s1617_s5, %s1607_s30, %s1520_s4, %s1520_s4, %s1521_s6  }
  0x3b PF: > { %175 = sbr.rel (!%p1586_p7) target bundleno = 94 (0x5e), region = 24  ;;  %s176_s7 = sand.u32 (%p1586_p7), 1, %s1505_s11  }
  0x3c   : > { %s185_s9 = smul.u32 (%p1586_p7), 12, %s1578_s17  ;;  %s1651_s25 = scalar_lea.sflag (%p1586_p7), [#allocation7], %s176_s7 }
  0x3d   : > { %s1145_s18 = smul.u32 (%p1586_p7), 192, %s176_s7 }
  0x3e   : > { %s186_s21 = ssub.s32 (%p1586_p7), 13, %s185_s9 }
  0x3f   : > { %p187_p1 = scmp.lt.s32.totalorder (%p1586_p7), %s186_s21, 12  ;;  %s180_s28 = scalar_lea.vmem (%p1586_p7), [#allocation6], %s1145_s18 }
  0x42   : > { %s2742_s21 = smov (!%p187_p1, %s186_s21), 12 }
  0x43   : > { %s1648_s22 = sshll.u32 %s2742_s21, 8 }
  0x44   : > { %s192_s24 = ssub.s32 3072, %s1648_s22 }
  0x45   : > { %193 = vsyncadd %s1651_s25, %s192_s24  ;;  %p1122_p7 = scmp.ne.s32.totalorder %s1648_s22, 0  ;;  %s1143_s19 = smul.u32 3072, %s1578_s17 }
  0x46   : > { %s199_s30 = sshll.u32 %s180_s28, 4  ;;  %s1409_s17 = scalar_lea.hbm %s2582_s1, 3328  ;;  %s1661_s30 = int_to_ptr.vmem [resolvable:$true] %s199_s30 }
  0x47   : > { %s1659_s26 = scalar_lea.hbm %s2582_s1, %s1143_s19 }
  0x48   : > { %s1405_s27 = scalar_lea.hbm %s1659_s26, %s1648_s22  ;;  %p1410_p9 = scmp.lt.u32.totalorder %s1659_s26, %s2582_s1 }
  0x49   : > { %p1406_p12 = scmp.ne.s32.totalorder %s1659_s26, %s1405_s27  ;;  %p1411_p10 = scmp.lt.u32.totalorder %s1409_s17, %s1405_s27 }
  0x4a   : > { %p1413_p13 = scmp.lt.u32.totalorder %s1405_s27, %s1659_s26 }
  0x4b   : > { %p1407_p5 = pnand %p1406_p12, %p1122_p7  ;;  %p1412_p11 = por %p1411_p10, %p1410_p9 }
  0x4d   : > { %p1408_p6 = pneg %p1407_p5  ;;  %p1414_p0 = por %p1413_p13, %p1412_p11 }
  0x4f   : > { %p1415_p2 = pnand %p1414_p0, %p1408_p6 }
  0x51   : > { %1418 = shalt.err (!%p1415_p2)
}
  0x52   : > { %s1419_s7 = scalar_lea.vmem %s1661_s30, %s1648_s22  ;;  %s1522_s9 = smov [#allocation6]  }
  0x53   : > { %p1420_p3 = scmp.ne.s32.totalorder %s1661_s30, %s1419_s7  ;;  %s1423_s18 = sshll.u32 %s1522_s9, 4  ;;  %s1424_s18 = int_to_ptr.vmem [resolvable:$false] %s1423_s18 }
  0x54   : > { %s1425_s21 = scalar_lea.vmem %s1424_s18, 6144  ;;  %p1426_p12 = scmp.lt.s32.totalorder %s1661_s30, %s1424_s18 }
  0x55   : > { %p1421_p4 = pnand %p1420_p3, %p1122_p7  ;;  %p1427_p5 = scmp.lt.s32.totalorder %s1425_s21, %s1419_s7 }
  0x57   : > { %p1422_p1 = pneg %p1421_p4  ;;  %p1428_p9 = por %p1427_p5, %p1426_p12 }
  0x59   : > { %p1429_p10 = pnand %p1428_p9, %p1422_p1 }
  0x5b   : > { %1432 = shalt.err (!%p1429_p10)
}
  0x5c   : > { %s1523_s24 = smov 256   ;;  %s1524_s28 = smov 16  }
  0x5d   : > { %205 = dma.hbm_to_vmem [thread:$0]  (%p1122_p7), %s1659_s26, %s1648_s22, %s1661_s30, %s1651_s25, %s1523_s24, %s1523_s24, %s1524_s28  }
  0x5e PF: > { %p1127_p6 = scmp.ge.s32.totalorder %s1517_s14, 1  ;;  %p207_p11 = scmp.lt.s32.totalorder %s1517_s14, 3 }
  0x60   : > { %p208_p13 = pnand %p1127_p6, %p207_p11 }
  0x62   : > { %211 = sbr.rel (%p208_p13) target bundleno = 744 (0x2e8), region = 28 }
  0x69   : > { %s213_s19 = sand.u32 1, %s1501_s10  }
  0x6a   : > { %s1146_s5 = smul.u32 192, %s213_s19  ;;  %s214_s8 = scalar_lea.sflag [#allocation4], %s213_s19 }
  0x6c   : > { %s1691_s27 = scalar_lea.vmem [#allocation3], %s1146_s5 }
  0x6d   : > { %1484 = dma.done.wait (%p1590_p8), %s214_s8, 3072  }
  0x6e   : > { %1486 = vsyncadd (%p1590_p8), %s214_s8, 4294964224  ;;  %s223_s22 = scalar_lea.sflag [#allocation7], %s213_s19  ;;  %s1697_s25 = scalar_lea.vmem [#allocation6], %s1146_s5 }
  0x6f   : > { %1488 = dma.done.wait (%p1590_p8), %s223_s22, 3072  }
  0x70   : > { %1490 = vsyncadd (%p1590_p8), %s223_s22, 4294964224  ;;  %p1128_p7 = scmp.ne.s32.totalorder %s1509_s12, 0 }
  0x71   : > { %vm272_vm0 = vcmask (!%p1128_p7), 588800   ;;  %v1525_v0 = vmov (!%p1128_p7), 0.0  }
  0x72   : > { %270 = sbr.rel (%p1128_p7) target bundleno = 121 (0x79), region = 40  ;;  %271 = vst [vmem:[#allocation2] sm:$0xff] (!%p1128_p7), %v1525_v0  ;;  %273 = vst.msk [vmem:[#allocation2 + $0x8] sm:$0xff] (!%p1128_p7), %vm272_vm0, %v1525_v0 }
  0x79 PF: > { %v1705_v1 = vld [vmem:[%s1691_s27 + $0x20] sm:$0xff]  ;;  %v1708_v2 = vld [vmem:[%s1691_s27 + $0x28] sm:$0xff]  ;;  %vm322_vm1 = vcmask 588800   ;;  %v1719_v6 = vld [vmem:[%s1691_s27 + $0x30] sm:$0xff]  ;;  %s829_s20 = smul.u32 96, %s1509_s12 }
  0x7a   : > { %v1711_v3 = vld [vmem:[%s1691_s27] sm:$0xff]  ;;  %v331_v4 = vsel %vm322_vm1, %v1708_v2, -inf  ;;  %v1716_v5 = vld [vmem:[%s1691_s27 + $0x8] sm:$0xff]  ;;  %v1722_v7 = vld [vmem:[%s1691_s27 + $0x38] sm:$0xff] }
  0x7b   : > { %v332_v8 = vmax.f32 %v1705_v1, %v331_v4  ;;  %v323_v9 = vsel %vm322_vm1, %v1716_v5, -inf  ;;  %v335_v10 = vsel %vm322_vm1, %v1722_v7, -inf  ;;  %v1730_v11 = vld [vmem:[%s1691_s27 + $0x10] sm:$0xff]  ;;  %v1733_v12 = vld [vmem:[%s1691_s27 + $0x18] sm:$0xff]  ;;  %v1742_v16 = vld [vmem:[%s1691_s27 + $0x48] sm:$0xff]  ;;  %s2274_s30 = sadd.s32 96, %s829_s20 }
  0x7c   : > { %v324_v13 = vmax.f32 %v1711_v3, %v323_v9  ;;  %v327_v14 = vsel %vm322_vm1, %v1733_v12, -inf  ;;  %v1739_v15 = vld [vmem:[%s1691_s27 + $0x58] sm:$0xff]  ;;  %v336_v17 = vmax.f32 %v1719_v6, %v335_v10  ;;  %v1747_v19 = vld [vmem:[%s1691_s27 + $0x50] sm:$0xff]  ;;  %v1752_v21 = vld [vmem:[%s1691_s27 + $0x40] sm:$0xff]  ;;  %v339_v22 = vsel %vm322_vm1, %v1742_v16, -inf  ;;  %p1129_p8 = scmp.gt.s32.totalorder %s2274_s30, 100 }
  0x7d   : > { %333 = vmax.xlane.f32.xlu1 %v332_v8  ;;  %v328_v18 = vmax.f32 %v1730_v11, %v327_v14  ;;  %v343_v20 = vsel %vm322_vm1, %v1739_v15, -inf  ;;  %v1757_v23 = vld [vmem:[%s1691_s27 + $0x78] sm:$0xff]  ;;  %v1760_v24 = vld [vmem:[%s1691_s27 + $0x68] sm:$0xff]  ;;  %v340_v26 = vmax.f32 %v1752_v21, %v339_v22  ;;  %v1765_v27 = vld [vmem:[%s1691_s27 + $0x70] sm:$0xff] }
  0x7e   : > { %325 = vmax.xlane.f32.xlu0 %v324_v13  ;;  %v344_v25 = vmax.f32 %v1747_v19, %v343_v20  ;;  %v351_v28 = vsel %vm322_vm1, %v1757_v23, -inf  ;;  %v1770_v29 = vld [vmem:[%s1691_s27 + $0x60] sm:$0xff]  ;;  %v347_v30 = vsel %vm322_vm1, %v1760_v24, -inf  ;;  %v1775_v31 = vld [vmem:[%s1691_s27 + $0x98] sm:$0xff]  ;;  %v1778_v32 = vld [vmem:[%s1691_s27 + $0x88] sm:$0xff] }
  0x7f   : > { %v352_v33 = vmax.f32 %v1765_v27, %v351_v28  ;;  %v348_v34 = vmax.f32 %v1770_v29, %v347_v30  ;;  %v1783_v35 = vld [vmem:[%s1691_s27 + $0x90] sm:$0xff]  ;;  %v359_v36 = vsel %vm322_vm1, %v1775_v31, -inf  ;;  %v1788_v37 = vld [vmem:[%s1691_s27 + $0x80] sm:$0xff]  ;;  %v355_v38 = vsel %vm322_vm1, %v1778_v32, -inf  ;;  %v1793_v39 = vld [vmem:[%s1691_s27 + $0xb8] sm:$0xff] }
  0x80   : > { %v1796_v40 = vld [vmem:[%s1691_s27 + $0xa8] sm:$0xff]  ;;  %v360_v41 = vmax.f32 %v1783_v35, %v359_v36  ;;  %v356_v42 = vmax.f32 %v1788_v37, %v355_v38  ;;  %v1801_v43 = vld [vmem:[%s1691_s27 + $0xb0] sm:$0xff]  ;;  %v367_v44 = vsel %vm322_vm1, %v1793_v39, -inf  ;;  %v1806_v45 = vld [vmem:[%s1691_s27 + $0xa0] sm:$0xff] }
  0x81   : > { %337 = vmax.xlane.f32.xlu1 %v336_v17  ;;  %v363_v46 = vsel %vm322_vm1, %v1796_v40, -inf  ;;  %v1811_v47 = vld [vmem:[%s1697_s25 + $0x18] sm:$0xff]  ;;  %v1814_v48 = vld [vmem:[%s1697_s25 + $0x8] sm:$0xff]  ;;  %v368_v49 = vmax.f32 %v1801_v43, %v367_v44  ;;  %v1819_v51 = vld [vmem:[%s1697_s25 + $0x10] sm:$0xff] }
  0x82   : > { %329 = vmax.xlane.f32.xlu0 %v328_v18  ;;  %v364_v50 = vmax.f32 %v1806_v45, %v363_v46  ;;  %v495_v52 = vsel %vm322_vm1, %v1811_v47, -inf  ;;  %v1824_v53 = vld [vmem:[%s1697_s25] sm:$0xff]  ;;  %v491_v54 = vsel %vm322_vm1, %v1814_v48, -inf  ;;  %v1829_v55 = vld [vmem:[%s1697_s25 + $0x38] sm:$0xff]  ;;  %v1832_v56 = vld [vmem:[%s1697_s25 + $0x28] sm:$0xff] }
  0x83   : > { %v496_v57 = vmax.f32 %v1819_v51, %v495_v52  ;;  %v492_v58 = vmax.f32 %v1824_v53, %v491_v54  ;;  %v1837_v59 = vld [vmem:[%s1697_s25 + $0x30] sm:$0xff]  ;;  %v503_v60 = vsel %vm322_vm1, %v1829_v55, -inf  ;;  %v1842_v61 = vld [vmem:[%s1697_s25 + $0x20] sm:$0xff]  ;;  %v499_v62 = vsel %vm322_vm1, %v1832_v56, -inf  ;;  %v1847_v63 = vld [vmem:[%s1697_s25 + $0x58] sm:$0xff] }
  0x84   : > { %v1850_v0 = vld [vmem:[%s1697_s25 + $0x48] sm:$0xff]  ;;  %v504_v4 = vmax.f32 %v1837_v59, %v503_v60  ;;  %v500_v8 = vmax.f32 %v1842_v61, %v499_v62  ;;  %v1855_v9 = vld [vmem:[%s1697_s25 + $0x50] sm:$0xff]  ;;  %v511_v10 = vsel %vm322_vm1, %v1847_v63, -inf  ;;  %v1860_v13 = vld [vmem:[%s1697_s25 + $0x40] sm:$0xff] }
  0x85   : > { %345 = vmax.xlane.f32.xlu1 %v344_v25  ;;  %v507_v14 = vsel %vm322_vm1, %v1850_v0, -inf  ;;  %v1865_v17 = vld [vmem:[%s1697_s25 + $0x78] sm:$0xff]  ;;  %v1868_v18 = vld [vmem:[%s1697_s25 + $0x68] sm:$0xff]  ;;  %v512_v20 = vmax.f32 %v1855_v9, %v511_v10  ;;  %v1873_v25 = vld [vmem:[%s1697_s25 + $0x70] sm:$0xff] }
  0x86   : > { %341 = vmax.xlane.f32.xlu0 %v340_v26  ;;  %v508_v22 = vmax.f32 %v1860_v13, %v507_v14  ;;  %v519_v26 = vsel %vm322_vm1, %v1865_v17, -inf  ;;  %v1878_v28 = vld [vmem:[%s1697_s25 + $0x60] sm:$0xff]  ;;  %v515_v30 = vsel %vm322_vm1, %v1868_v18, -inf }
  0x87   : > { %v520_v36 = vmax.f32 %v1873_v25, %v519_v26  ;;  %v516_v38 = vmax.f32 %v1878_v28, %v515_v30  ;;  %v1896_v44 = vld [vmem:[%s1697_s25 + $0x80] sm:$0xff] }
  0x88   : > { %v1914_v60 = vld [vmem:[%s1697_s25 + $0xa0] sm:$0xff] }
  0x89   : > { %353 = vmax.xlane.f32.xlu1 %v352_v33  ;;  %v1883_v33 = vld [vmem:[%s1697_s25 + $0x98] sm:$0xff]  ;;  %2628 = vst [vmem:[#allocation15_spill] sm:$0xff] %v1914_v60 }
  0x8a   : > { %349 = vmax.xlane.f32.xlu0 %v348_v34  ;;  %v1886_v34 = vld [vmem:[%s1697_s25 + $0x88] sm:$0xff] }
  0x8b   : > { %v523_v46 = vsel %vm322_vm1, %v1886_v34, -inf }
  0x8c   : > { %v524_v54 = vmax.f32 %v1896_v44, %v523_v46 }
  0x8d   : > { %361 = vmax.xlane.f32.xlu1 %v360_v41  ;;  %v1891_v41 = vld [vmem:[%s1697_s25 + $0x90] sm:$0xff] }
  0x8e   : > { %357 = vmax.xlane.f32.xlu0 %v356_v42  ;;  %v527_v42 = vsel %vm322_vm1, %v1883_v33, -inf }
  0x8f   : > { %v528_v52 = vmax.f32 %v1891_v41, %v527_v42 }
  0x91   : > { %369 = vmax.xlane.f32.xlu1 %v368_v49  ;;  %v1901_v49 = vld [vmem:[%s1697_s25 + $0xb8] sm:$0xff] }
  0x92   : > { %365 = vmax.xlane.f32.xlu0 %v364_v50  ;;  %2625 = vst [vmem:[#allocation12_spill] sm:$0xff] %v1901_v49  ;;  %v1904_v50 = vld [vmem:[%s1697_s25 + $0xa8] sm:$0xff] }
  0x93   : > { %2626 = vst [vmem:[#allocation13_spill] sm:$0xff] %v1904_v50  ;;  %v531_v62 = vsel %vm322_vm1, %v1904_v50, -inf }
  0x95   : > { %497 = vmax.xlane.f32.xlu1 %v496_v57  ;;  %v1909_v57 = vld [vmem:[%s1697_s25 + $0xb0] sm:$0xff] }
  0x96   : > { %493 = vmax.xlane.f32.xlu0 %v492_v58  ;;  %2627 = vst [vmem:[#allocation14_spill] sm:$0xff] %v1909_v57  ;;  %v535_v58 = vsel %vm322_vm1, %v1901_v49, -inf }
  0x99   : > { %505 = vmax.xlane.f32.xlu1 %v504_v4  ;;  %v536_v4 = vmax.f32 %v1909_v57, %v535_v58 }
  0x9a   : > { %501 = vmax.xlane.f32.xlu0 %v500_v8  ;;  %v532_v8 = vmax.f32 %v1914_v60, %v531_v62 }
  0x9d   : > { %513 = vmax.xlane.f32.xlu1 %v512_v20 }
  0x9e   : > { %509 = vmax.xlane.f32.xlu0 %v508_v22 }
  0xa1   : > { %521 = vmax.xlane.f32.xlu1 %v520_v36 }
  0xa2   : > { %517 = vmax.xlane.f32.xlu0 %v516_v38 }
  0xa5   : > { %529 = vmax.xlane.f32.xlu1 %v528_v52 }
  0xa6   : > { %525 = vmax.xlane.f32.xlu0 %v524_v54 }
  0xa9   : > { %537 = vmax.xlane.f32.xlu1 %v536_v4 }
  0xaa   : > { %533 = vmax.xlane.f32.xlu0 %v532_v8 }
 0x10a   : > { %v334_v10 = vpop.xlane.xlu1 %333 }
 0x10b   : > { %v1921_v14 = vsub.f32 %v1705_v1, %v334_v10  ;;  %v1924_v20 = vsub.f32 %v1708_v2, %v334_v10  ;;  %v326_v22 = vpop.xlane.xlu0 %325 }
 0x10c   : > { %v1927_v26 = vsub.f32 %v1711_v3, %v326_v22  ;;  %v1930_v30 = vsub.f32 %v1716_v5, %v326_v22 }
 0x10d   : > { %v403_v36 = vmul.f32 1.442695, %v1921_v14  ;;  %v405_v38 = vmul.f32 1.442695, %v1924_v20 }
 0x10e   : > { %v395_v42 = vmul.f32 1.442695, %v1927_v26  ;;  %v397_v46 = vmul.f32 1.442695, %v1930_v30  ;;  %v338_v1 = vpop.xlane.xlu1 %337 }
 0x10f   : > { %1209 = vpow2.f32 %v403_v36  ;;  %v1937_v2 = vsub.f32 %v1719_v6, %v338_v1  ;;  %v1940_v52 = vsub.f32 %v1722_v7, %v338_v1  ;;  %v330_v3 = vpop.xlane.xlu0 %329 }
 0x110   : > { %1211 = vpow2.f32 %v405_v38  ;;  %v1943_v5 = vsub.f32 %v1730_v11, %v330_v3  ;;  %v1946_v54 = vsub.f32 %v1733_v12, %v330_v3 }
 0x111   : > { %2629 = vst [vmem:[#allocation16_spill] sm:$0xff] %v1937_v2  ;;  %2630 = vst [vmem:[#allocation17_spill] sm:$0xff] %v1940_v52  ;;  %1213 = vpow2.f32 %v395_v42  ;;  %v407_v58 = vmul.f32 1.442695, %v1937_v2  ;;  %v409_v62 = vmul.f32 1.442695, %v1940_v52 }
 0x112   : > { %1215 = vpow2.f32 %v397_v46  ;;  %v399_v6 = vmul.f32 1.442695, %v1943_v5  ;;  %v401_v4 = vmul.f32 1.442695, %v1946_v54  ;;  %v346_v7 = vpop.xlane.xlu1 %345 }
 0x113   : > { %1217 = vpow2.f32 %v407_v58  ;;  %v1953_v8 = vsub.f32 %v1747_v19, %v346_v7  ;;  %v1956_v11 = vsub.f32 %v1739_v15, %v346_v7  ;;  %v342_v12 = vpop.xlane.xlu0 %341 }
 0x114   : > { %1219 = vpow2.f32 %v409_v62  ;;  %v1959_v10 = vsub.f32 %v1752_v21, %v342_v12  ;;  %v1962_v22 = vsub.f32 %v1742_v16, %v342_v12 }
 0x115   : > { %2631 = vst [vmem:[#allocation18_spill] sm:$0xff] %v1953_v8  ;;  %2632 = vst [vmem:[#allocation19_spill] sm:$0xff] %v1956_v11  ;;  %1221 = vpow2.f32 %v399_v6  ;;  %v415_v36 = vmul.f32 1.442695, %v1953_v8  ;;  %v417_v38 = vmul.f32 1.442695, %v1956_v11 }
 0x116   : > { %1223 = vpow2.f32 %v401_v4  ;;  %v411_v19 = vmul.f32 1.442695, %v1959_v10  ;;  %v413_v42 = vmul.f32 1.442695, %v1962_v22  ;;  %v354_v15 = vpop.xlane.xlu1 %353 }
 0x117   : > { %1225 = vpow2.f32 %v415_v36  ;;  %v1969_v46 = vsub.f32 %v1765_v27, %v354_v15  ;;  %v1972_v21 = vsub.f32 %v1757_v23, %v354_v15  ;;  %v350_v16 = vpop.xlane.xlu0 %349 }
 0x118   : > { %1227 = vpow2.f32 %v417_v38  ;;  %v1975_v1 = vsub.f32 %v1770_v29, %v350_v16  ;;  %v1978_v3 = vsub.f32 %v1760_v24, %v350_v16 }
 0x119   : > { %2633 = vst [vmem:[#allocation20_spill] sm:$0xff] %v1969_v46  ;;  %2634 = vst [vmem:[#allocation21_spill] sm:$0xff] %v1972_v21  ;;  %v1210_v58 = vpop.eup %1209  ;;  %1229 = vpow2.f32 %v411_v19  ;;  %v423_v62 = vmul.f32 1.442695, %v1969_v46  ;;  %v425_v6 = vmul.f32 1.442695, %v1972_v21 }
 0x11a   : > { %v1212_v4 = vpop.eup %1211  ;;  %1231 = vpow2.f32 %v413_v42  ;;  %v419_v27 = vmul.f32 1.442695, %v1975_v1  ;;  %v421_v23 = vmul.f32 1.442695, %v1978_v3  ;;  %v362_v7 = vpop.xlane.xlu1 %361 }
 0x11b   : > { %v1214_v12 = vpop.eup %1213  ;;  %1233 = vpow2.f32 %v423_v62  ;;  %v1985_v29 = vsub.f32 %v1783_v35, %v362_v7  ;;  %v1988_v24 = vsub.f32 %v1775_v31, %v362_v7  ;;  %v358_v36 = vpop.xlane.xlu0 %357  ;;  %v451_v38 = vsel %vm322_vm1, %v1212_v4, 0.0 }
 0x11c   : > { %v1216_v19 = vpop.eup %1215  ;;  %1235 = vpow2.f32 %v425_v6  ;;  %v1992_v42 = vsub.f32 %v1788_v37, %v358_v36  ;;  %v1995_v15 = vsub.f32 %v1778_v32, %v358_v36  ;;  %v452_v16 = vadd.f32 %v1210_v58, %v451_v38 }
 0x11d   : > { %2635 = vst [vmem:[#allocation22_spill] sm:$0xff] %v1985_v29  ;;  %2636 = vst [vmem:[#allocation23_spill] sm:$0xff] %v1988_v24  ;;  %v1218_v50 = vpop.eup %1217  ;;  %1237 = vpow2.f32 %v419_v27  ;;  %v431_v35 = vmul.f32 1.442695, %v1985_v29  ;;  %v433_v62 = vmul.f32 1.442695, %v1988_v24 }
 0x11e   : > { %2637 = vst [vmem:[#allocation24_spill] sm:$0xff] %v1992_v42  ;;  %2638 = vst [vmem:[#allocation25_spill] sm:$0xff] %v1995_v15  ;;  %v443_v31 = vsel %vm322_vm1, %v1216_v19, 0.0  ;;  %v1220_v7 = vpop.eup %1219  ;;  %1239 = vpow2.f32 %v421_v23  ;;  %v427_v4 = vmul.f32 1.442695, %v1992_v42  ;;  %v370_v60 = vpop.xlane.xlu1 %369 }
 0x11f   : > { %v429_v6 = vmul.f32 1.442695, %v1995_v15  ;;  %v444_v37 = vadd.f32 %v1214_v12, %v443_v31  ;;  %v1222_v49 = vpop.eup %1221  ;;  %1241 = vpow2.f32 %v431_v35  ;;  %v2003_v32 = vsub.f32 %v1801_v43, %v370_v60  ;;  %v366_v27 = vpop.xlane.xlu0 %365 }
 0x120   : > { %v2006_v58 = vsub.f32 %v1793_v39, %v370_v60  ;;  %v455_v36 = vsel %vm322_vm1, %v1220_v7, 0.0  ;;  %v1224_v38 = vpop.eup %1223  ;;  %1243 = vpow2.f32 %v433_v62  ;;  %v2010_v23 = vsub.f32 %v1806_v45, %v366_v27 }
 0x121   : > { %2639 = vst [vmem:[#allocation26_spill] sm:$0xff] %v2003_v32  ;;  %445 = vadd.xlane.f32.xlu0 %v444_v37  ;;  %v2013_v12 = vsub.f32 %v1796_v40, %v366_v27  ;;  %v456_v19 = vadd.f32 %v1218_v50, %v455_v36  ;;  %v1226_v35 = vpop.eup %1225  ;;  %1245 = vpow2.f32 %v427_v4  ;;  %v439_v43 = vmul.f32 1.442695, %v2003_v32 }
 0x122   : > { %2640 = vst [vmem:[#allocation27_spill] sm:$0xff] %v2006_v58  ;;  %2641 = vst [vmem:[#allocation28_spill] sm:$0xff] %v2010_v23  ;;  %v441_v39 = vmul.f32 1.442695, %v2006_v58  ;;  %v447_v60 = vsel %vm322_vm1, %v1224_v38, 0.0  ;;  %v1228_v31 = vpop.eup %1227  ;;  %1247 = vpow2.f32 %v429_v6  ;;  %v498_v37 = vpop.xlane.xlu1 %497 }
 0x123   : > { %2642 = vst [vmem:[#allocation29_spill] sm:$0xff] %v2013_v12  ;;  %v435_v62 = vmul.f32 1.442695, %v2010_v23  ;;  %v437_v7 = vmul.f32 1.442695, %v2013_v12  ;;  %v448_v45 = vadd.f32 %v1222_v49, %v447_v60  ;;  %v1230_v57 = vpop.eup %1229  ;;  %1249 = vpow2.f32 %v439_v43  ;;  %v494_v4 = vpop.xlane.xlu0 %493 }
 0x124   : > { %v2021_v40 = vsub.f32 %v1819_v51, %v498_v37  ;;  %v2024_v50 = vsub.f32 %v1811_v47, %v498_v37  ;;  %v463_v27 = vsel %vm322_vm1, %v1228_v31, 0.0  ;;  %v1232_v36 = vpop.eup %1231  ;;  %1251 = vpow2.f32 %v441_v39 }
 0x125   : > { %453 = vadd.xlane.f32.xlu0 %v452_v16  ;;  %449 = vadd.xlane.f32.xlu1 %v448_v45  ;;  %v2028_v6 = vsub.f32 %v1824_v53, %v494_v4  ;;  %v2031_v49 = vsub.f32 %v1814_v48, %v494_v4  ;;  %v464_v38 = vadd.f32 %v1226_v35, %v463_v27  ;;  %v2033_v43 = vpop.eup %1233  ;;  %1253 = vpow2.f32 %v435_v62 }
 0x126   : > { %v567_v47 = vmul.f32 1.442695, %v2021_v40  ;;  %v569_v51 = vmul.f32 1.442695, %v2024_v50  ;;  %v1236_v39 = vpop.eup %1235  ;;  %1255 = vpow2.f32 %v437_v7  ;;  %v506_v35 = vpop.xlane.xlu1 %505  ;;  %v459_v37 = vsel %vm322_vm1, %v1232_v36, 0.0 }
 0x127   : > { %v563_v16 = vmul.f32 1.442695, %v2028_v6  ;;  %v565_v48 = vmul.f32 1.442695, %v2031_v49  ;;  %v1238_v31 = vpop.eup %1237  ;;  %v502_v4 = vpop.xlane.xlu0 %501  ;;  %v460_v27 = vadd.f32 %v1230_v57, %v459_v37  ;;  %v2049_v53 = vsub.f32 %v1837_v59, %v506_v35 }
 0x128   : > { %1257 = vpow2.f32 %v567_v47  ;;  %v1240_v7 = vpop.eup %1239  ;;  %v2052_v60 = vsub.f32 %v1829_v55, %v506_v35  ;;  %v2057_v62 = vsub.f32 %v1842_v61, %v502_v4  ;;  %v2060_v45 = vsub.f32 %v1832_v56, %v502_v4 }
 0x129   : > { %1259 = vpow2.f32 %v569_v51  ;;  %457 = vadd.xlane.f32.xlu1 %v456_v19  ;;  %v2054_v47 = vpop.eup %1241  ;;  %v467_v36 = vsel %vm322_vm1, %v1240_v7, 0.0  ;;  %461 = vadd.xlane.f32.xlu0 %v460_v27  ;;  %v575_v59 = vmul.f32 1.442695, %v2049_v53 }
 0x12a   : > { %1261 = vpow2.f32 %v563_v16  ;;  %v2063_v51 = vpop.eup %1243  ;;  %v577_v55 = vmul.f32 1.442695, %v2052_v60  ;;  %v514_v19 = vpop.xlane.xlu1 %513  ;;  %v571_v56 = vmul.f32 1.442695, %v2057_v62  ;;  %v573_v35 = vmul.f32 1.442695, %v2060_v45 }
 0x12b   : > { %1263 = vpow2.f32 %v565_v48  ;;  %v1246_v16 = vpop.eup %1245  ;;  %v510_v37 = vpop.xlane.xlu0 %509  ;;  %v468_v27 = vadd.f32 %v1238_v31, %v467_v36  ;;  %v2078_v57 = vsub.f32 %v1855_v9, %v514_v19  ;;  %v2083_v61 = vsub.f32 %v1847_v63, %v514_v19 }
 0x12c   : > { %v1248_v4 = vpop.eup %1247  ;;  %1265 = vpow2.f32 %v575_v59  ;;  %v2086_v52 = vsub.f32 %v1860_v13, %v510_v37  ;;  %v2089_v48 = vsub.f32 %v1850_v0, %v510_v37  ;;  %v471_v31 = vsel %vm322_vm1, %v1236_v39, 0.0 }
 0x12d   : > { %465 = vadd.xlane.f32.xlu1 %v464_v38  ;;  %v2080_v2 = vpop.eup %1249  ;;  %1267 = vpow2.f32 %v577_v55  ;;  %2643 = vst [vmem:[#allocation30_spill] sm:$0xff] %v2083_v61  ;;  %469 = vadd.xlane.f32.xlu0 %v468_v27  ;;  %v583_v38 = vmul.f32 1.442695, %v2078_v57  ;;  %v585_v13 = vmul.f32 1.442695, %v2083_v61  ;;  %v475_v0 = vsel %vm322_vm1, %v1248_v4, 0.0 }
 0x12e   : > { %v2091_v59 = vpop.eup %1251  ;;  %1269 = vpow2.f32 %v571_v56  ;;  %v522_v36 = vpop.xlane.xlu1 %521  ;;  %v579_v55 = vmul.f32 1.442695, %v2086_v52  ;;  %v581_v37 = vmul.f32 1.442695, %v2089_v48 }
 0x12f   : > { %v1254_v63 = vpop.eup %1253  ;;  %1271 = vpow2.f32 %v573_v35  ;;  %v518_v19 = vpop.xlane.xlu0 %517  ;;  %v472_v35 = vadd.f32 %v2033_v43, %v471_v31  ;;  %v2111_v7 = vsub.f32 %v1873_v25, %v522_v36  ;;  %v2116_v61 = vsub.f32 %v1865_v17, %v522_v36 }
 0x130   : > { %v1256_v56 = vpop.eup %1255  ;;  %1273 = vpow2.f32 %v583_v38  ;;  %v476_v38 = vadd.f32 %v1246_v16, %v475_v0  ;;  %v2119_v27 = vsub.f32 %v1878_v28, %v518_v19  ;;  %v2127_v4 = vsub.f32 %v1868_v18, %v518_v19 }
 0x131   : > { %1275 = vpow2.f32 %v585_v13  ;;  %2644 = vst [vmem:[#allocation31_spill] sm:$0xff] %v2111_v7  ;;  %2645 = vst [vmem:[#allocation32_spill] sm:$0xff] %v2116_v61  ;;  %473 = vadd.xlane.f32.xlu1 %v472_v35  ;;  %v591_v43 = vmul.f32 1.442695, %v2111_v7  ;;  %v593_v17 = vmul.f32 1.442695, %v2116_v61 }
 0x132   : > { %v2106_v9 = vpop.eup %1257  ;;  %1277 = vpow2.f32 %v579_v55  ;;  %v530_v39 = vpop.xlane.xlu1 %529  ;;  %477 = vadd.xlane.f32.xlu0 %v476_v38  ;;  %v587_v36 = vmul.f32 1.442695, %v2119_v27  ;;  %v589_v0 = vmul.f32 1.442695, %v2127_v4  ;;  %v479_v55 = vsel %vm322_vm1, %v2063_v51, 0.0 }
 0x133   : > { %v2113_v11 = vpop.eup %1259  ;;  %1279 = vpow2.f32 %v581_v37  ;;  %v526_v16 = vpop.xlane.xlu0 %525  ;;  %v480_v37 = vadd.f32 %v2054_v47, %v479_v55  ;;  %v483_v35 = vsel %vm322_vm1, %v1256_v56, 0.0  ;;  %v2147_v38 = vsub.f32 %v1891_v41, %v530_v39  ;;  %v2650_v47 = vld [vmem:[#allocation14_spill] sm:$0xff]  ;;  %v2652_v55 = vld [vmem:[#allocation12_spill] sm:$0xff] }
 0x134   : > { %v2121_v8 = vpop.eup %1261  ;;  %1281 = vpow2.f32 %v591_v43  ;;  %v484_v43 = vadd.f32 %v1254_v63, %v483_v35  ;;  %v2152_v25 = vsub.f32 %v1883_v33, %v530_v39  ;;  %v2155_v18 = vsub.f32 %v1896_v44, %v526_v16 }
 0x135   : > { %v2129_v31 = vpop.eup %1263  ;;  %1283 = vpow2.f32 %v593_v17  ;;  %2646 = vst [vmem:[#allocation33_spill] sm:$0xff] %v2147_v38  ;;  %481 = vadd.xlane.f32.xlu1 %v480_v37  ;;  %v2162_v41 = vsub.f32 %v1886_v34, %v526_v16  ;;  %v599_v34 = vmul.f32 1.442695, %v2147_v38  ;;  %v487_v37 = vsel %vm322_vm1, %v2091_v59, 0.0  ;;  %v2654_v59 = vld [vmem:[#allocation15_spill] sm:$0xff] }
 0x136   : > { %v2142_v19 = vpop.eup %1265  ;;  %1285 = vpow2.f32 %v587_v36  ;;  %2647 = vst [vmem:[#allocation34_spill] sm:$0xff] %v2152_v25  ;;  %2648 = vst [vmem:[#allocation35_spill] sm:$0xff] %v2155_v18  ;;  %v538_v56 = vpop.xlane.xlu1 %537  ;;  %485 = vadd.xlane.f32.xlu0 %v484_v43  ;;  %v601_v33 = vmul.f32 1.442695, %v2152_v25  ;;  %v595_v63 = vmul.f32 1.442695, %v2155_v18  ;;  %v488_v43 = vadd.f32 %v2080_v2, %v487_v37 }
 0x137   : > { %v2149_v28 = vpop.eup %1267  ;;  %1287 = vpow2.f32 %v589_v0  ;;  %2649 = vst [vmem:[#allocation36_spill] sm:$0xff] %v2162_v41  ;;  %v534_v36 = vpop.xlane.xlu0 %533  ;;  %v597_v16 = vmul.f32 1.442695, %v2162_v41  ;;  %v611_v44 = vsel %vm322_vm1, %v2129_v31, 0.0  ;;  %v2186_v39 = vsub.f32 %v2650_v47, %v538_v56  ;;  %v2656_v47 = vld [vmem:[#allocation13_spill] sm:$0xff] }
 0x138   : > { %v2157_v51 = vpop.eup %1269  ;;  %1289 = vpow2.f32 %v601_v33  ;;  %v612_v24 = vadd.f32 %v2121_v8, %v611_v44  ;;  %v2192_v25 = vsub.f32 %v2652_v55, %v538_v56  ;;  %v2195_v29 = vsub.f32 %v2654_v59, %v534_v36 }
 0x139   : > { %v2164_v17 = vpop.eup %1271  ;;  %2651 = vst [vmem:[#allocation14_spill] sm:$0xff] %v2186_v39  ;;  %1291 = vpow2.f32 %v595_v63  ;;  %489 = vadd.xlane.f32.xlu1 %v488_v43  ;;  %v2202_v37 = vsub.f32 %v2656_v47, %v534_v36  ;;  %v623_v2 = vsel %vm322_vm1, %v2149_v28, 0.0  ;;  %v607_v55 = vmul.f32 1.442695, %v2186_v39 }
 0x13a   : > { %v2172_v0 = vpop.eup %1273  ;;  %2653 = vst [vmem:[#allocation12_spill] sm:$0xff] %v2192_v25  ;;  %2655 = vst [vmem:[#allocation15_spill] sm:$0xff] %v2195_v29  ;;  %1293 = vpow2.f32 %v597_v16  ;;  %613 = vadd.xlane.f32.xlu0 %v612_v24  ;;  %v609_v63 = vmul.f32 1.442695, %v2192_v25  ;;  %v603_v44 = vmul.f32 1.442695, %v2195_v29 }
 0x13b   : > { %v2180_v35 = vpop.eup %1275  ;;  %2657 = vst [vmem:[#allocation13_spill] sm:$0xff] %v2202_v37  ;;  %1295 = vpow2.f32 %v599_v34  ;;  %v605_v16 = vmul.f32 1.442695, %v2202_v37  ;;  %v615_v24 = vsel %vm322_vm1, %v2113_v11, 0.0  ;;  %v619_v56 = vsel %vm322_vm1, %v2164_v17, 0.0 }
 0x13c   : > { %v2188_v13 = vpop.eup %1277  ;;  %1297 = vpow2.f32 %v609_v63  ;;  %v616_v47 = vadd.f32 %v2106_v9, %v615_v24  ;;  %v620_v36 = vadd.f32 %v2157_v51, %v619_v56  ;;  %v624_v63 = vadd.f32 %v2142_v19, %v623_v2 }
 0x13d   : > { %v2197_v33 = vpop.eup %1279  ;;  %1299 = vpow2.f32 %v603_v44  ;;  %v631_v32 = vsel %vm322_vm1, %v2180_v35, 0.0 }
 0x13e   : > { %v2210_v59 = vpop.eup %1281  ;;  %v627_v58 = vsel %vm322_vm1, %v2197_v33, 0.0  ;;  %1301 = vpow2.f32 %v605_v16  ;;  %617 = vadd.xlane.f32.xlu1 %v616_v47  ;;  %621 = vadd.xlane.f32.xlu0 %v620_v36  ;;  %v632_v16 = vadd.f32 %v2172_v0, %v631_v32 }
 0x13f   : > { %2658 = vst [vmem:[#allocation37_spill] sm:$0xff] %v2210_v59  ;;  %v2217_v43 = vpop.eup %1283  ;;  %v628_v24 = vadd.f32 %v2188_v13, %v627_v58  ;;  %1303 = vpow2.f32 %v607_v55 }
 0x140   : > { %2659 = vst [vmem:[#allocation38_spill] sm:$0xff] %v2217_v43  ;;  %v2224_v34 = vpop.eup %1285  ;;  %v639_v58 = vsel %vm322_vm1, %v2217_v43, 0.0 }
 0x141   : > { %v2230_v25 = vpop.eup %1287  ;;  %v640_v55 = vadd.f32 %v2210_v59, %v639_v58  ;;  %v2670_v59 = vsub.f32 %v2028_v6, %v1927_v26 }
 0x142   : > { %v635_v44 = vsel %vm322_vm1, %v2230_v25, 0.0  ;;  %v2238_v39 = vpop.eup %1289  ;;  %625 = vadd.xlane.f32.xlu1 %v624_v63  ;;  %629 = vadd.xlane.f32.xlu0 %v628_v24 }
 0x143   : > { %2660 = vst [vmem:[#allocation39_spill] sm:$0xff] %v2238_v39  ;;  %v2240_v56 = vpop.eup %1291  ;;  %v636_v2 = vadd.f32 %v2224_v34, %v635_v44  ;;  %v647_v24 = vsel %vm322_vm1, %v2238_v39, 0.0 }
 0x144   : > { %2661 = vst [vmem:[#allocation40_spill] sm:$0xff] %v2240_v56  ;;  %v2243_v47 = vpop.eup %1293 }
 0x145   : > { %2662 = vst [vmem:[#allocation41_spill] sm:$0xff] %v2243_v47  ;;  %v643_v36 = vsel %vm322_vm1, %v2243_v47, 0.0  ;;  %v2250_v12 = vpop.eup %1295 }
 0x146   : > { %2663 = vst [vmem:[#allocation42_spill] sm:$0xff] %v2250_v12  ;;  %v2252_v37 = vpop.eup %1297  ;;  %633 = vadd.xlane.f32.xlu1 %v632_v16  ;;  %637 = vadd.xlane.f32.xlu0 %v636_v2  ;;  %v644_v32 = vadd.f32 %v2240_v56, %v643_v36  ;;  %v648_v16 = vadd.f32 %v2250_v12, %v647_v24 }
 0x147   : > { %2664 = vst [vmem:[#allocation43_spill] sm:$0xff] %v2252_v37  ;;  %v2255_v63 = vpop.eup %1299  ;;  %v655_v2 = vsel %vm322_vm1, %v2252_v37, 0.0 }
 0x148   : > { %2665 = vst [vmem:[#allocation44_spill] sm:$0xff] %v2255_v63  ;;  %v2260_v44 = vpop.eup %1301 }
 0x149   : > { %2666 = vst [vmem:[#allocation45_spill] sm:$0xff] %v2260_v44  ;;  %v651_v23 = vsel %vm322_vm1, %v2260_v44, 0.0  ;;  %v2265_v29 = vpop.eup %1303 }
 0x14a   : > { %641 = vadd.xlane.f32.xlu1 %v640_v55  ;;  %2667 = vst [vmem:[#allocation46_spill] sm:$0xff] %v2265_v29  ;;  %645 = vadd.xlane.f32.xlu0 %v644_v32  ;;  %v652_v58 = vadd.f32 %v2255_v63, %v651_v23  ;;  %v656_v36 = vadd.f32 %v2265_v29, %v655_v2 }
 0x14e   : > { %649 = vadd.xlane.f32.xlu1 %v648_v16  ;;  %653 = vadd.xlane.f32.xlu0 %v652_v58 }
 0x152   : > { %657 = vadd.xlane.f32.xlu1 %v656_v36 }
 0x1ae   : > { %v446_v55 = vpop.xlane.xlu0 %445 }
 0x1af   : > { %1305 = vlog2.f32 %v446_v55 }
 0x1b2   : > { %v450_v44 = vpop.xlane.xlu1 %449  ;;  %v454_v24 = vpop.xlane.xlu0 %453 }
 0x1b3   : > { %1307 = vlog2.f32 %v450_v44 }
 0x1b4   : > { %1309 = vlog2.f32 %v454_v24 }
 0x1b6   : > { %v458_v38 = vpop.xlane.xlu1 %457  ;;  %v462_v39 = vpop.xlane.xlu0 %461 }
 0x1b7   : > { %1311 = vlog2.f32 %v458_v38 }
 0x1b8   : > { %1313 = vlog2.f32 %v462_v39 }
 0x1b9   : > { %v1306_v37 = vpop.eup %1305 }
 0x1ba   : > { %v466_v32 = vpop.xlane.xlu1 %465  ;;  %v470_v12 = vpop.xlane.xlu0 %469  ;;  %v744_v18 = vmul.f32 0.6931472, %v1306_v37 }
 0x1bb   : > { %1315 = vlog2.f32 %v466_v32 }
 0x1bc   : > { %1317 = vlog2.f32 %v470_v12 }
 0x1bd   : > { %v1308_v29 = vpop.eup %1307 }
 0x1be   : > { %v474_v23 = vpop.xlane.xlu1 %473  ;;  %v1310_v15 = vpop.eup %1309 }
 0x1bf   : > { %v478_v63 = vpop.xlane.xlu0 %477  ;;  %1319 = vlog2.f32 %v474_v23  ;;  %v748_v61 = vmul.f32 0.6931472, %v1310_v15 }
 0x1c0   : > { %1321 = vlog2.f32 %v478_v63 }
 0x1c1   : > { %v1312_v55 = vpop.eup %1311 }
 0x1c2   : > { %v482_v16 = vpop.xlane.xlu1 %481  ;;  %v1314_v24 = vpop.eup %1313  ;;  %v750_v46 = vmul.f32 0.6931472, %v1312_v55 }
 0x1c3   : > { %v486_v58 = vpop.xlane.xlu0 %485  ;;  %1323 = vlog2.f32 %v482_v16 }
 0x1c5   : > { %v1316_v39 = vpop.eup %1315 }
 0x1c6   : > { %v2276_v2 = vpop.xlane.xlu1 %489  ;;  %v1318_v12 = vpop.eup %1317 }
 0x1c7   : > { %v614_v36 = vpop.xlane.xlu0 %613 }
 0x1c8   : > { %1325 = vlog2.f32 %v614_v36 }
 0x1c9   : > { %1327 = vrcp.f32 %v614_v36  ;;  %v1320_v63 = vpop.eup %1319 }
 0x1ca   : > { %1329 = vlog2.f32 %v486_v58  ;;  %v2278_v16 = vpop.eup %1321 }
 0x1cb   : > { %v618_v44 = vpop.xlane.xlu1 %617  ;;  %v622_v38 = vpop.xlane.xlu0 %621 }
 0x1cc   : > { %1331 = vrcp.f32 %v618_v44 }
 0x1cd   : > { %1333 = vlog2.f32 %v618_v44  ;;  %v2280_v36 = vpop.eup %1323 }
 0x1ce   : > { %1335 = vrcp.f32 %v622_v38  ;;  %2668 = vst [vmem:[#allocation47_spill] sm:$0xff] %v2280_v36  ;;  %v752_v36 = vmul.f32 0.6931472, %v1314_v24  ;;  %v754_v24 = vmul.f32 0.6931472, %v1316_v39 }
 0x1cf   : > { %1337 = vlog2.f32 %v622_v38  ;;  %v626_v32 = vpop.xlane.xlu1 %625  ;;  %v630_v23 = vpop.xlane.xlu0 %629  ;;  %v746_v38 = vmul.f32 0.6931472, %v1308_v29  ;;  %v2671_v29 = vsub.f32 %v2031_v49, %v1930_v30 }
 0x1d0   : > { %1339 = vrcp.f32 %v626_v32 }
 0x1d1   : > { %1341 = vlog2.f32 %v626_v32 }
 0x1d2   : > { %1343 = vrcp.f32 %v630_v23  ;;  %v1326_v58 = vpop.eup %1325 }
 0x1d3   : > { %1345 = vlog2.f32 %v630_v23  ;;  %v634_v41 = vpop.xlane.xlu1 %633  ;;  %v1328_v42 = vpop.eup %1327  ;;  %v720_v44 = vmul.f32 0.6931472, %v1326_v58 }
 0x1d4   : > { %1347 = vrcp.f32 %v634_v41  ;;  %v638_v47 = vpop.xlane.xlu0 %637  ;;  %v2282_v56 = vpop.eup %1329  ;;  %v671_v43 = vmul.f32 %v1328_v42, %v2121_v8  ;;  %v672_v23 = vmul.f32 %v1328_v42, %v2129_v31  ;;  %v2292_v8 = vmul.f32 0.6931472, %v1320_v63 }
 0x1d5   : > { %2669 = vst [vmem:[#allocation48_spill] sm:$0xff] %v2282_v56  ;;  %1349 = vlog2.f32 %v634_v41  ;;  %v767_v7 = vsub.f32 %v720_v44, %v744_v18  ;;  %v756_v44 = vmul.f32 0.6931472, %v1318_v12  ;;  %v2672_v12 = vsub.f32 %v2021_v40, %v1943_v5 }
 0x1d6   : > { %v1332_v21 = vpop.eup %1331  ;;  %1351 = vrcp.f32 %v638_v47  ;;  %v2674_v5 = vsub.f32 %v2057_v62, %v1921_v14  ;;  %v2675_v40 = vsub.f32 %v2060_v45, %v1924_v20  ;;  %v2676_v20 = vld [vmem:[#allocation16_spill] sm:$0xff] }
 0x1d7   : > { %v1334_v32 = vpop.eup %1333  ;;  %1353 = vlog2.f32 %v638_v47  ;;  %v642_v37 = vpop.xlane.xlu1 %641  ;;  %v779_v56 = vsub.f32 %v2670_v59, %v767_v7  ;;  %v780_v15 = vsub.f32 %v2671_v29, %v767_v7  ;;  %v673_v30 = vmul.f32 %v1332_v21, %v2106_v9 }
 0x1d8   : > { %v1336_v58 = vpop.eup %1335  ;;  %v722_v41 = vmul.f32 0.6931472, %v1334_v32  ;;  %1355 = vrcp.f32 %v642_v37  ;;  %v646_v18 = vpop.xlane.xlu0 %645  ;;  %v674_v49 = vmul.f32 %v1332_v21, %v2113_v11  ;;  %v2677_v45 = vsub.f32 %v2049_v53, %v2676_v20 }
 0x1d9   : > { %v1338_v55 = vpop.eup %1337  ;;  %1357 = vlog2.f32 %v642_v37  ;;  %v2294_v31 = vmul.f32 %v779_v56, %v671_v43  ;;  %v2296_v47 = vmul.f32 %v780_v15, %v672_v23  ;;  %v675_v7 = vmul.f32 %v1336_v58, %v2157_v51 }
 0x1da   : > { %v1340_v42 = vpop.eup %1339  ;;  %v768_v26 = vsub.f32 %v722_v41, %v746_v38  ;;  %v724_v6 = vmul.f32 0.6931472, %v1338_v55  ;;  %1359 = vrcp.f32 %v646_v18  ;;  %v2673_v43 = vsub.f32 %v2024_v50, %v1946_v54 }
 0x1db   : > { %v1342_v59 = vpop.eup %1341  ;;  %v676_v37 = vmul.f32 %v1336_v58, %v2164_v17  ;;  %v677_v9 = vmul.f32 %v1340_v42, %v2142_v19  ;;  %v678_v11 = vmul.f32 %v1340_v42, %v2149_v28  ;;  %1361 = vlog2.f32 %v646_v18 }
 0x1dc   : > { %v1344_v39 = vpop.eup %1343  ;;  %v781_v63 = vsub.f32 %v2672_v12, %v768_v26  ;;  %v782_v56 = vsub.f32 %v2673_v43, %v768_v26  ;;  %v769_v32 = vsub.f32 %v724_v6, %v748_v61  ;;  %v726_v38 = vmul.f32 0.6931472, %v1342_v59  ;;  %v650_v61 = vpop.xlane.xlu1 %649  ;;  %v2682_v43 = vld [vmem:[#allocation18_spill] sm:$0xff] }
 0x1dd   : > { %v1346_v23 = vpop.eup %1345  ;;  %v679_v19 = vmul.f32 %v1344_v39, %v2188_v13  ;;  %v680_v28 = vmul.f32 %v1344_v39, %v2197_v33  ;;  %1363 = vrcp.f32 %v650_v61  ;;  %v2680_v53 = vsub.f32 %v2086_v52, %v1959_v10 }
 0x1de   : > { %v1348_v21 = vpop.eup %1347  ;;  %v2310_v51 = vmul.f32 %v781_v63, %v673_v30  ;;  %v2312_v29 = vmul.f32 %v782_v56, %v674_v49  ;;  %v783_v54 = vsub.f32 %v2674_v5, %v769_v32  ;;  %v784_v50 = vsub.f32 %v2675_v40, %v769_v32  ;;  %v2685_v32 = vld [vmem:[#allocation19_spill] sm:$0xff] }
 0x1df   : > { %v1350_v17 = vpop.eup %1349  ;;  %v770_v58 = vsub.f32 %v726_v38, %v750_v46  ;;  %v728_v15 = vmul.f32 0.6931472, %v1346_v23  ;;  %v681_v14 = vmul.f32 %v1348_v21, %v2172_v0  ;;  %v2678_v46 = vld [vmem:[#allocation17_spill] sm:$0xff]  ;;  %v682_v30 = vmul.f32 %v1348_v21, %v2180_v35 }
 0x1e0   : > { %v1352_v41 = vpop.eup %1351  ;;  %v2322_v18 = vmul.f32 %v783_v54, %v675_v7  ;;  %v2324_v55 = vmul.f32 %v784_v50, %v676_v37  ;;  %v730_v62 = vmul.f32 0.6931472, %v1350_v17  ;;  %v2679_v6 = vsub.f32 %v2052_v60, %v2678_v46 }
 0x1e1   : > { %v1354_v42 = vpop.eup %1353  ;;  %v785_v26 = vsub.f32 %v2677_v45, %v770_v58  ;;  %v771_v59 = vsub.f32 %v728_v15, %v752_v36  ;;  %1365 = vlog2.f32 %v650_v61  ;;  %v2681_v60 = vsub.f32 %v2089_v48, %v1962_v22  ;;  %v654_v48 = vpop.xlane.xlu0 %653 }
 0x1e2   : > { %v786_v13 = vsub.f32 %v2679_v6, %v770_v58  ;;  %v1356_v33 = vpop.eup %1355  ;;  %v772_v49 = vsub.f32 %v730_v62, %v754_v24  ;;  %v732_v7 = vmul.f32 0.6931472, %v1354_v42  ;;  %v2683_v56 = vsub.f32 %v2078_v57, %v2682_v43  ;;  %v2684_v24 = vld [vmem:[#allocation30_spill] sm:$0xff]  ;;  %v2695_v42 = vld [vmem:[#allocation21_spill] sm:$0xff] }
 0x1e3   : > { %v1358_v39 = vpop.eup %1357  ;;  %v2334_v0 = vmul.f32 %v785_v26, %v677_v9  ;;  %v787_v63 = vsub.f32 %v2680_v53, %v771_v59  ;;  %v788_v36 = vsub.f32 %v2681_v60, %v771_v59  ;;  %v2686_v38 = vsub.f32 %v2684_v24, %v2685_v32  ;;  %v2703_v60 = vld [vmem:[#allocation25_spill] sm:$0xff] }
 0x1e4   : > { %v2336_v12 = vmul.f32 %v786_v13, %v678_v11  ;;  %v789_v35 = vsub.f32 %v2683_v56, %v772_v49  ;;  %v683_v37 = vmul.f32 %v1352_v41, %v2224_v34  ;;  %v773_v9 = vsub.f32 %v732_v7, %v756_v44  ;;  %v1360_v11 = vpop.eup %1359  ;;  %v2697_v13 = vld [vmem:[#allocation40_spill] sm:$0xff]  ;;  %v2705_v56 = vld [vmem:[#allocation47_spill] sm:$0xff] }
 0x1e5   : > { %v790_v23 = vsub.f32 %v2686_v38, %v772_v49  ;;  %v2351_v21 = vmul.f32 %v787_v63, %v679_v19  ;;  %v2353_v52 = vmul.f32 %v788_v36, %v680_v28  ;;  %v684_v10 = vmul.f32 %v1352_v41, %v2230_v25  ;;  %v1362_v50 = vpop.eup %1361  ;;  %v2689_v25 = vld [vmem:[#allocation37_spill] sm:$0xff]  ;;  %v658_v19 = vpop.xlane.xlu1 %657  ;;  %v2699_v49 = vld [vmem:[#allocation35_spill] sm:$0xff]  ;;  %v2700_v7 = vld [vmem:[#allocation24_spill] sm:$0xff] }
 0x1e6   : > { %v734_v22 = vmul.f32 0.6931472, %v1358_v39  ;;  %v2356_v5 = vmul.f32 %v789_v35, %v681_v14  ;;  %v2687_v54 = vsub.f32 %v2119_v27, %v1975_v1  ;;  %v2688_v34 = vsub.f32 %v2127_v4, %v1978_v3  ;;  %v2690_v27 = vld [vmem:[#allocation38_spill] sm:$0xff]  ;;  %v2691_v3 = vld [vmem:[#allocation31_spill] sm:$0xff]  ;;  %v2692_v4 = vld [vmem:[#allocation20_spill] sm:$0xff] }
 0x1e7   : > { %v2358_v57 = vmul.f32 %v790_v23, %v682_v30  ;;  %v760_v61 = vmul.f32 0.6931472, %v2278_v16  ;;  %1367 = vlog2.f32 %v2276_v2  ;;  %v685_v17 = vmul.f32 %v1356_v33, %v2689_v25  ;;  %v2694_v16 = vld [vmem:[#allocation32_spill] sm:$0xff] }
 0x1e8   : > { %v791_v40 = vsub.f32 %v2687_v54, %v773_v9  ;;  %v792_v44 = vsub.f32 %v2688_v34, %v773_v9  ;;  %v774_v58 = vsub.f32 %v734_v22, %v2292_v8  ;;  %v736_v1 = vmul.f32 0.6931472, %v1362_v50  ;;  %v1364_v8 = vpop.eup %1363  ;;  %v2702_v63 = vld [vmem:[#allocation36_spill] sm:$0xff]  ;;  %v2706_v9 = vld [vmem:[#allocation42_spill] sm:$0xff]  ;;  %v2712_v50 = vld [vmem:[#allocation23_spill] sm:$0xff] }
 0x1e9   : > { %1369 = vlog2.f32 %v654_v48  ;;  %v686_v41 = vmul.f32 %v1356_v33, %v2690_v27  ;;  %v2693_v14 = vsub.f32 %v2691_v3, %v2692_v4  ;;  %v2696_v2 = vsub.f32 %v2694_v16, %v2695_v42  ;;  %v2698_v33 = vld [vmem:[#allocation41_spill] sm:$0xff]  ;;  %v2709_v54 = vld [vmem:[#allocation22_spill] sm:$0xff] }
 0x1ea   : > { %v2370_v28 = vmul.f32 %v791_v40, %v683_v37  ;;  %v2372_v15 = vmul.f32 %v792_v44, %v684_v10  ;;  %1371 = vrcp.f32 %v654_v48  ;;  %v775_v45 = vsub.f32 %v736_v1, %v760_v61  ;;  %v2708_v48 = vld [vmem:[#allocation33_spill] sm:$0xff]  ;;  %v2711_v44 = vld [vmem:[#allocation34_spill] sm:$0xff] }
 0x1eb   : > { %v793_v62 = vsub.f32 %v2693_v14, %v774_v58  ;;  %v794_v20 = vsub.f32 %v2696_v2, %v774_v58  ;;  %1373 = vlog2.f32 %v658_v19  ;;  %v1366_v6 = vpop.eup %1365  ;;  %v687_v59 = vmul.f32 %v1360_v11, %v2697_v13  ;;  %v2715_v2 = vld [vmem:[#allocation44_spill] sm:$0xff] }
 0x1ec   : > { %1375 = vrcp.f32 %v658_v19  ;;  %v688_v30 = vmul.f32 %v1360_v11, %v2698_v33  ;;  %v2701_v39 = vsub.f32 %v2699_v49, %v2700_v7  ;;  %v2704_v36 = vsub.f32 %v2702_v63, %v2703_v60  ;;  %v2707_v11 = vld [vmem:[#allocation39_spill] sm:$0xff]  ;;  %v2714_v19 = vld [vmem:[#allocation48_spill] sm:$0xff]  ;;  %v2721_v49 = vld [vmem:[#allocation29_spill] sm:$0xff] }
 0x1ed   : > { %v2381_v26 = vmul.f32 %v793_v62, %v685_v17  ;;  %v2383_v46 = vmul.f32 %v794_v20, %v686_v41  ;;  %v762_v35 = vmul.f32 0.6931472, %v2705_v56  ;;  %v738_v24 = vmul.f32 0.6931472, %v1366_v6  ;;  %v2717_v6 = vld [vmem:[#allocation15_spill] sm:$0xff]  ;;  %v2718_v13 = vld [vmem:[#allocation28_spill] sm:$0xff] }
 0x1ee   : > { %v795_v53 = vsub.f32 %v2701_v39, %v775_v45  ;;  %v796_v43 = vsub.f32 %v2704_v36, %v775_v45  ;;  %v689_v10 = vmul.f32 %v1364_v8, %v2706_v9  ;;  %v690_v22 = vmul.f32 %v1364_v8, %v2707_v11  ;;  %v2716_v45 = vld [vmem:[#allocation45_spill] sm:$0xff]  ;;  %v2723_v63 = vld [vmem:[#allocation46_spill] sm:$0xff]  ;;  %v2724_v36 = vld [vmem:[#allocation43_spill] sm:$0xff] }
 0x1ef   : > { %v776_v23 = vsub.f32 %v738_v24, %v762_v35  ;;  %v2710_v40 = vsub.f32 %v2708_v48, %v2709_v54  ;;  %v2713_v61 = vsub.f32 %v2711_v44, %v2712_v50  ;;  %v764_v1 = vmul.f32 0.6931472, %v2714_v19  ;;  %v2725_v24 = vld [vmem:[#allocation14_spill] sm:$0xff]  ;;  %v2729_v11 = vld [vmem:[#allocation27_spill] sm:$0xff] }
 0x1f0   : > { %v2394_v32 = vmul.f32 %v795_v53, %v687_v59  ;;  %v2396_v38 = vmul.f32 %v796_v43, %v688_v30  ;;  %v2719_v59 = vsub.f32 %v2717_v6, %v2718_v13  ;;  %v2720_v30 = vld [vmem:[#allocation13_spill] sm:$0xff]  ;;  %v849_v44 = vsel (!%p1129_p8), %vm322_vm1, %v2296_v47, 0.0 }
 0x1f1   : > { %v1368_v37 = vpop.eup %1367  ;;  %v797_v34 = vsub.f32 %v2710_v40, %v776_v23  ;;  %v798_v25 = vsub.f32 %v2713_v61, %v776_v23  ;;  %v2722_v7 = vsub.f32 %v2720_v30, %v2721_v49  ;;  %v2726_v23 = vld [vmem:[#allocation26_spill] sm:$0xff]  ;;  %v850_v50 = vsel (!%p1129_p8), %vm322_vm1, %v2312_v29, 0.0 }
 0x1f2   : > { %v766_v62 = vmul.f32 0.6931472, %v1368_v37  ;;  %v2727_v37 = vsub.f32 %v2725_v24, %v2726_v23  ;;  %v852_v61 = vsel (!%p1129_p8), %vm322_vm1, %v2324_v55, 0.0 }
 0x1f3   : > { %v1370_v17 = vpop.eup %1369  ;;  %v2407_v27 = vmul.f32 %v797_v34, %v689_v10  ;;  %v2409_v41 = vmul.f32 %v798_v25, %v690_v22  ;;  %v2728_v10 = vld [vmem:[#allocation12_spill] sm:$0xff]  ;;  %v838_v34 = vadd.f32 (!%p1129_p8), %v2310_v51, %v2294_v31  ;;  %v851_v25 = vadd.f32 (!%p1129_p8), %v850_v50, %v849_v44 }
 0x1f4   : > { %v1372_v58 = vpop.eup %1371  ;;  %v740_v3 = vmul.f32 0.6931472, %v1370_v17  ;;  %v2730_v22 = vsub.f32 %v2728_v10, %v2729_v11 }
 0x1f5   : > { %v1374_v4 = vpop.eup %1373  ;;  %v691_v20 = vmul.f32 %v1372_v58, %v2715_v2  ;;  %v692_v8 = vmul.f32 %v1372_v58, %v2716_v45  ;;  %v839_v17 = vadd.f32 (!%p1129_p8), %v838_v34, %v2322_v18  ;;  %v854_v58 = vsel (!%p1129_p8), %vm322_vm1, %v2336_v12, 0.0 }
 0x1f6   : > { %v1376_v14 = vpop.eup %1375  ;;  %v777_v16 = vsub.f32 %v740_v3, %v764_v1  ;;  %v742_v42 = vmul.f32 0.6931472, %v1374_v4  ;;  %835 = sbr.rel (%p1129_p8) target bundleno = 526 (0x20e), region = 44  ;;  %v853_v19 = vadd.f32 (!%p1129_p8), %v852_v61, %v851_v25  ;;  %v856_v3 = vsel (!%p1129_p8), %vm322_vm1, %v2353_v52, 0.0 }
 0x1f7   : > { %v693_v60 = vmul.f32 %v1376_v14, %v2723_v63  ;;  %v694_v43 = vmul.f32 %v1376_v14, %v2724_v36  ;;  %v840_v1 = vadd.f32 (!%p1129_p8), %v839_v17, %v2334_v0  ;;  %v860_v2 = vsel (!%p1129_p8), %vm322_vm1, %v2372_v15, 0.0 }
 0x1f8   : > { %v799_v33 = vsub.f32 %v2719_v59, %v777_v16  ;;  %v800_v39 = vsub.f32 %v2722_v7, %v777_v16  ;;  %v778_v53 = vsub.f32 %v742_v42, %v766_v62  ;;  %v855_v4 = vadd.f32 (!%p1129_p8), %v854_v58, %v853_v19 }
 0x1f9   : > { %v841_v14 = vadd.f32 (!%p1129_p8), %v840_v1, %v2351_v21  ;;  %v858_v62 = vsel (!%p1129_p8), %vm322_vm1, %v2358_v57, 0.0  ;;  %v864_v59 = vsel (!%p1129_p8), %vm322_vm1, %v2396_v38, 0.0  ;;  %v866_v49 = vsel (!%p1129_p8), %vm322_vm1, %v2409_v41, 0.0 }
 0x1fa   : > { %v2421_v56 = vmul.f32 %v799_v33, %v691_v20  ;;  %v2423_v35 = vmul.f32 %v800_v39, %v692_v8  ;;  %v801_v9 = vsub.f32 %v2727_v37, %v778_v53  ;;  %v802_v48 = vsub.f32 %v2730_v22, %v778_v53  ;;  %v837_v37 = vld [vmem:[#allocation2 + $0x8] sm:$0xff] (!%p1129_p8) }
 0x1fb   : > { %v857_v16 = vadd.f32 (!%p1129_p8), %v856_v3, %v855_v4  ;;  %v842_v42 = vadd.f32 (!%p1129_p8), %v841_v14, %v2356_v5  ;;  %v862_v8 = vsel (!%p1129_p8), %vm322_vm1, %v2383_v46, 0.0 }
 0x1fc   : > { %v2431_v54 = vmul.f32 %v801_v9, %v693_v60  ;;  %v2433_v40 = vmul.f32 %v802_v48, %v694_v43  ;;  %v868_v53 = vsel (!%p1129_p8), %vm322_vm1, %v2423_v35, 0.0  ;;  %v836_v43 = vld [vmem:[#allocation2] sm:$0xff] (!%p1129_p8) }
 0x1fd   : > { %v859_v20 = vadd.f32 %v858_v62, %v857_v16  ;;  %v843_v45 = vadd.f32 %v842_v42, %v2370_v28 }
 0x1fe   : > { %v870_v36 = vsel %vm322_vm1, %v2433_v40, 0.0 }
 0x1ff   : > { %v861_v6 = vadd.f32 %v860_v2, %v859_v20  ;;  %v844_v13 = vadd.f32 %v843_v45, %v2381_v26 }
 0x201   : > { %v863_v33 = vadd.f32 %v862_v8, %v861_v6  ;;  %v845_v30 = vadd.f32 %v844_v13, %v2394_v32 }
 0x203   : > { %v865_v7 = vadd.f32 %v864_v59, %v863_v33  ;;  %v846_v39 = vadd.f32 %v845_v30, %v2407_v27 }
 0x205   : > { %v867_v63 = vadd.f32 %v866_v49, %v865_v7  ;;  %v847_v60 = vadd.f32 %v846_v39, %v2421_v56 }
 0x207   : > { %v869_v24 = vadd.f32 %v868_v53, %v867_v63  ;;  %v848_v23 = vadd.f32 %v847_v60, %v2431_v54 }
 0x209   : > { %v871_v9 = vadd.f32 %v870_v36, %v869_v24  ;;  %v872_v10 = vadd.f32 %v848_v23, %v836_v43 }
 0x20b   : > { %v873_v11 = vadd.f32 %v871_v9, %v837_v37  ;;  %874 = vst [vmem:[#allocation2] sm:$0xff] %v872_v10 }
 0x20d   : > { %875 = vst.msk [vmem:[#allocation2 + $0x8] sm:$0xff] %vm322_vm1, %v873_v11 }
 0x20e PF: > { %p1130_p0 = scmp.le.s32.totalorder %s2274_s30, 100 }
 0x20f   : > { %v879_v22 = vlaneseq (!%p1130_p0)  ;;  %v892_v34 = vstv (!%p1130_p0), %s829_s20 }
 0x210   : > { %878 = sbr.rel (%p1130_p0) target bundleno = 566 (0x236), region = 48 }
 0x211   : > { %v880_v48 = vshrl.u32 (!%p1130_p0), %v879_v22, 7 }
 0x213   : > { %v881_v44 = vadd.s32 (!%p1130_p0), 8, %v880_v48  ;;  %v882_v50 = vadd.s32 (!%p1130_p0), 16, %v880_v48  ;;  %v883_v61 = vadd.s32 (!%p1130_p0), 24, %v880_v48  ;;  %v893_v25 = vadd.s32 (!%p1130_p0), %v892_v34, %v880_v48 }
 0x214   : > { %v884_v17 = vadd.s32 (!%p1130_p0), 32, %v880_v48  ;;  %v885_v1 = vadd.s32 (!%p1130_p0), 40, %v880_v48  ;;  %v886_v4 = vadd.s32 (!%p1130_p0), 48, %v880_v48  ;;  %v887_v16 = vadd.s32 (!%p1130_p0), 56, %v880_v48 }
 0x215   : > { %v894_v58 = vadd.s32 (!%p1130_p0), %v892_v34, %v881_v44  ;;  %v895_v19 = vadd.s32 (!%p1130_p0), %v892_v34, %v882_v50  ;;  %v896_v3 = vadd.s32 (!%p1130_p0), %v892_v34, %v883_v61  ;;  %vm905_vm2 = vcmp.lt.s32.totalorder (!%p1130_p0), %v893_v25, 100 }
 0x216   : > { %v897_v14 = vadd.s32 (!%p1130_p0), %v892_v34, %v884_v17  ;;  %v941_v62 = vsel (!%p1130_p0), %vm905_vm2, %v2294_v31, 0.0  ;;  %v898_v42 = vadd.s32 (!%p1130_p0), %v892_v34, %v885_v1  ;;  %v888_v20 = vadd.s32 (!%p1130_p0), 64, %v880_v48 }
 0x217   : > { %vm906_vm3 = vcmp.lt.s32.totalorder %v894_v58, 100  ;;  %vm907_vm4 = vcmp.lt.s32.totalorder %v895_v19, 100  ;;  %vm908_vm5 = vcmp.lt.s32.totalorder %v896_v3, 100  ;;  %v889_v8 = vadd.s32 72, %v880_v48 }
 0x218   : > { %v943_v2 = vsel %vm906_vm3, %v2310_v51, 0.0  ;;  %v945_v45 = vsel %vm907_vm4, %v2322_v18, 0.0  ;;  %v899_v6 = vadd.s32 %v892_v34, %v886_v4  ;;  %vm909_vm6 = vcmp.lt.s32.totalorder %v897_v14, 100 }
 0x219   : > { %v967_v13 = vadd.f32 %v943_v2, %v941_v62  ;;  %v890_v59 = vadd.s32 80, %v880_v48  ;;  %v947_v33 = vsel %vm908_vm5, %v2334_v0, 0.0  ;;  %v942_v31 = vsel %vm905_vm2, %v2296_v47, 0.0  ;;  %v965_v2 = vld [vmem:[#allocation2] sm:$0xff] }
 0x21a   : > { %v944_v30 = vsel %vm906_vm3, %v2312_v29, 0.0  ;;  %v900_v49 = vadd.s32 %v892_v34, %v887_v16  ;;  %vm910_vm7 = vcmp.lt.s32.totalorder %v898_v42, 100  ;;  %v946_v18 = vsel %vm907_vm4, %v2324_v55, 0.0 }
 0x21b   : > { %v968_v51 = vadd.f32 %v967_v13, %v945_v45  ;;  %v891_v7 = vadd.s32 88, %v880_v48  ;;  %v901_v39 = vadd.s32 %v892_v34, %v888_v20  ;;  %v949_v53 = vsel %vm909_vm6, %v2351_v21, 0.0 }
 0x21c   : > { %v948_v0 = vsel %vm908_vm5, %v2336_v12, 0.0  ;;  %vm911_vm8 = vcmp.lt.s32.totalorder %v899_v6, 100  ;;  %v978_v47 = vsel %vm322_vm1, %v942_v31, 0.0  ;;  %v979_v29 = vsel %vm322_vm1, %v944_v30, 0.0 }
 0x21d   : > { %v969_v63 = vadd.f32 %v968_v51, %v947_v33  ;;  %v951_v60 = vsel %vm910_vm7, %v2356_v5, 0.0  ;;  %v950_v55 = vsel %vm909_vm6, %v2353_v52, 0.0  ;;  %v980_v36 = vadd.f32 %v979_v29, %v978_v47 }
 0x21e   : > { %v981_v43 = vsel %vm322_vm1, %v946_v18, 0.0  ;;  %v902_v24 = vadd.s32 %v892_v34, %v889_v8  ;;  %vm912_vm9 = vcmp.lt.s32.totalorder %v900_v49, 100  ;;  %v983_v12 = vsel %vm322_vm1, %v948_v0, 0.0 }
 0x21f   : > { %v970_v21 = vadd.f32 %v969_v63, %v949_v53  ;;  %v953_v23 = vsel %vm911_vm8, %v2370_v28, 0.0  ;;  %v952_v37 = vsel %vm910_vm7, %v2358_v57, 0.0  ;;  %v982_v9 = vadd.f32 %v981_v43, %v980_v36 }
 0x220   : > { %v903_v10 = vadd.s32 %v892_v34, %v890_v59  ;;  %vm913_vm10 = vcmp.lt.s32.totalorder %v901_v39, 100  ;;  %v985_v52 = vsel %vm322_vm1, %v950_v55, 0.0  ;;  %v955_v11 = vsel %vm912_vm9, %v2381_v26, 0.0 }
 0x221   : > { %v971_v5 = vadd.f32 %v970_v21, %v951_v60  ;;  %v954_v22 = vsel %vm911_vm8, %v2372_v15, 0.0  ;;  %v984_v48 = vadd.f32 %v983_v12, %v982_v9  ;;  %v904_v44 = vadd.s32 %v892_v34, %v891_v7 }
 0x222   : > { %vm914_vm11 = vcmp.lt.s32.totalorder %v902_v24, 100  ;;  %v987_v28 = vsel %vm322_vm1, %v952_v37, 0.0  ;;  %v957_v57 = vsel %vm913_vm10, %v2394_v32, 0.0  ;;  %v956_v61 = vsel %vm912_vm9, %v2383_v46, 0.0 }
 0x223   : > { %v972_v50 = vadd.f32 %v971_v5, %v953_v23  ;;  %v986_v25 = vadd.f32 %v985_v52, %v984_v48  ;;  %vm915_vm12 = vcmp.lt.s32.totalorder %v903_v10, 100  ;;  %v989_v26 = vsel %vm322_vm1, %v954_v22, 0.0 }
 0x224   : > { %v959_v15 = vsel %vm914_vm11, %v2407_v27, 0.0  ;;  %v958_v34 = vsel %vm913_vm10, %v2396_v38, 0.0  ;;  %vm916_vm13 = vcmp.lt.s32.totalorder %v904_v44, 100  ;;  %v991_v1 = vsel %vm322_vm1, %v956_v61, 0.0 }
 0x225   : > { %v973_v17 = vadd.f32 %v972_v50, %v955_v11  ;;  %v988_v58 = vadd.f32 %v987_v28, %v986_v25  ;;  %v961_v32 = vsel %vm915_vm12, %v2421_v56, 0.0  ;;  %v960_v46 = vsel %vm914_vm11, %v2409_v41, 0.0 }
 0x226   : > { %v993_v14 = vsel %vm322_vm1, %v958_v34, 0.0  ;;  %v963_v62 = vsel %vm916_vm13, %v2431_v54, 0.0  ;;  %v962_v27 = vsel %vm915_vm12, %v2423_v35, 0.0  ;;  %v995_v42 = vsel %vm322_vm1, %v960_v46, 0.0  ;;  %v966_v54 = vld [vmem:[#allocation2 + $0x8] sm:$0xff] }
 0x227   : > { %v974_v19 = vadd.f32 %v973_v17, %v957_v57  ;;  %v990_v3 = vadd.f32 %v989_v26, %v988_v58  ;;  %v964_v20 = vsel %vm916_vm13, %v2433_v40, 0.0  ;;  %v997_v8 = vsel %vm322_vm1, %v962_v27, 0.0 }
 0x228   : > { %v999_v13 = vsel %vm322_vm1, %v964_v20, 0.0 }
 0x229   : > { %v975_v4 = vadd.f32 %v974_v19, %v959_v15  ;;  %v992_v16 = vadd.f32 %v991_v1, %v990_v3 }
 0x22b   : > { %v976_v38 = vadd.f32 %v975_v4, %v961_v32  ;;  %v994_v45 = vadd.f32 %v993_v14, %v992_v16 }
 0x22d   : > { %v977_v56 = vadd.f32 %v976_v38, %v963_v62  ;;  %v996_v41 = vadd.f32 %v995_v42, %v994_v45 }
 0x22f   : > { %v1001_v6 = vadd.f32 %v977_v56, %v965_v2  ;;  %v998_v59 = vadd.f32 %v997_v8, %v996_v41 }
 0x231   : > { %1003 = vst [vmem:[#allocation2] sm:$0xff] %v1001_v6  ;;  %v1000_v33 = vadd.f32 %v999_v13, %v998_v59 }
 0x233   : > { %v1002_v35 = vadd.f32 %v1000_v33, %v966_v54 }
 0x235   : > { %1004 = vst.msk [vmem:[#allocation2 + $0x8] sm:$0xff] %vm322_vm1, %v1002_v35 }
 0x236 PF: > { %p1131_p2 = scmp.ne.s32.totalorder %s1509_s12, 1 }
 0x237   : > { %vm1015_vm14 = vcmask (!%p1131_p2), 7168  }
 0x238   : > { %1008 = sbr.rel (%p1131_p2) target bundleno = 719 (0x2cf), region = 52  ;;  %v1009_v40 = vld [vmem:[#allocation2] sm:$0xff] (!%p1131_p2) }
 0x23c   : > { %v1010_v31 = vld [vmem:[#allocation2 + $0x8] sm:$0xff] (!%p1131_p2) }
 0x23d   : > { %v1011_v30 = vsel (!%p1131_p2), %vm322_vm1, %v1010_v31, 0.0 }
 0x23e   : > { %v1012_v49 = vadd.f32 (!%p1131_p2), %v1011_v30, %v1009_v40 }
 0x240   : > { %1013 = vadd.xlane.f32.xlu0 %v1012_v49 }
 0x2cd   : > { %v1014_v51 = vpop.xlane.xlu0 %1013 }
 0x2ce   : > { %1016 = vst.msk [vmem:[#allocation8] sm:$0xff] %vm1015_vm14, %v1014_v51 }
 0x2cf PF: > { %p2537_p3 = scmp.eq.s32.totalorder %s1110_s16, 1  ;;  %s1526_s29 = smov [#allocation8]  }
 0x2d0   : > { %s1026_s12 = sshll.u32 %s1526_s29, 4  ;;  %s1027_s12 = int_to_ptr.vmem [resolvable:$true] %s1026_s12 }
 0x2d1   : > { %s1433_s3 = scalar_lea.vmem %s1027_s12, 128  ;;  %p1440_p5 = scmp.lt.s32.totalorder %s1027_s12, %s1027_s12 }
 0x2d2   : > { %p1434_p4 = scmp.ne.s32.totalorder %s1027_s12, %s1433_s3  ;;  %p1441_p9 = scmp.lt.s32.totalorder %s1433_s3, %s1433_s3 }
 0x2d4   : > { %p1435_p1 = pnand %p1434_p4, %p2537_p3  ;;  %p1442_p10 = por %p1441_p9, %p1440_p5 }
 0x2d6   : > { %p1436_p12 = pneg %p1435_p1 }
 0x2d8   : > { %p1443_p6 = pnand %p1442_p10, %p1436_p12 }
 0x2da   : > { %1446 = shalt.err (!%p1443_p6)
}
 0x2db   : > { %s1447_s16 = scalar_lea.hbm %s2583_s2, 128 }
 0x2dc   : > { %p1448_p11 = scmp.ne.s32.totalorder %s2583_s2, %s1447_s16  ;;  %p1453_p8 = scmp.lt.u32.totalorder %s1447_s16, %s2583_s2 }
 0x2de   : > { %p1449_p13 = pnand %p1448_p11, %p2537_p3 }
 0x2e0   : > { %p1450_p7 = pneg %p1449_p13 }
 0x2e2   : > { %p1455_p0 = pnand %p1453_p8, %p1450_p7 }
 0x2e4   : > { %1458 = shalt.err (!%p1455_p0)
}
 0x2e5   : > { %1150 = dma.vmem_to_hbm [thread:$0]  (%p2537_p3), %s1027_s12, 128, %s2583_s2, [#allocation5]  }
 0x2e6   : > { %1492 = dma.done.wait (%p2537_p3), [#allocation5], 128  }
 0x2e7   : > { %1494 = vsyncadd (%p2537_p3), [#allocation5], 4294967168 }
 0x2e8 PF: > { %s19_s14 = sadd.s32 1, %s1517_s14   ;;  %s2732_s9 = smov %s1501_s10 }
 0x2e9   : > { %p16_p2 = scmp.ge.s32.totalorder %s19_s14, 4   ;;  %s2733_s10 = smov %s1505_s11 }
 0x2ea   : > { %s2734_s11 = smov %s1597_s23  ;;  %s2735_s12 = smov %s1513_s13 }
 0x2eb   : > { %s2736_s13 = smov %s2738_s15  ;;  %18 = sbr.rel (!%p16_p2) target bundleno = 7 (0x7), region = 95 }
 0x2f2   :  { %1039 = vsyncpa [#allocation4], 1 }
 0x2f3   :  { %1041 = vsyncpa [#allocation4 + $0x1], 1 }
 0x2f4   :  { %1042 = vsyncpa [#allocation7], 1 }
 0x2f5   :  { %1044 = vsyncpa [#allocation7 + $0x1], 1 }
 0x2f6   :  { %1045 = vsyncpa [#allocation5], 1 }
 0x2f7   :  { %1047 = vsyncpa [#allocation5 + $0x1], 1 }

</bundles_post_ra>
